<compile_context>
chip_gen: v6e
topology: v6e:2x2x1
jax: 0.10.0
libtpu: 0.0.40
codegen_flags: <defaults>
</compile_context>

<pallas_src>
import functools

import jax
import jax.numpy as jnp
from jax.experimental import pallas as pl
from jax.experimental.pallas import tpu as pltpu

BN_EPS = 1e-5  # nn.BatchNorm2d default eps

_SINGLE_BUFFER_OK = False  # set by probe_single_buffering() (must run outside jit)


def probe_single_buffering():
    """Eagerly check whether pipeline_mode=pl.Buffered(1) lowers and runs correctly.

    Grid-invariant weight/scale operands gain nothing from double buffering; single
    buffering halves their VMEM footprint (matters most under v7x's 64 MiB budget).
    Falls back silently to default double buffering if unsupported.
    """
    global _SINGLE_BUFFER_OK
    try:
        def _k(x_ref, o_ref):
            o_ref[...] = x_ref[...] + 1.0

        r = pl.pallas_call(
            _k,
            out_shape=jax.ShapeDtypeStruct((8, 128), jnp.float32),
            grid=(1,),
            in_specs=[pl.BlockSpec((8, 128), lambda i: (0, 0),
                                   pipeline_mode=pl.Buffered(1))],
            out_specs=pl.BlockSpec((8, 128), lambda i: (0, 0)),
        )(jnp.zeros((8, 128), jnp.float32))
        _SINGLE_BUFFER_OK = bool(jnp.allclose(jax.block_until_ready(r), 1.0))
    except Exception:
        _SINGLE_BUFFER_OK = False
    return _SINGLE_BUFFER_OK


def _const_spec(shape):
    """BlockSpec for a grid-invariant operand (full block, constant index map)."""
    nd = len(shape)
    idx = lambda i: (0,) * nd
    if _SINGLE_BUFFER_OK:
        return pl.BlockSpec(shape, idx, pipeline_mode=pl.Buffered(1))
    return pl.BlockSpec(shape, idx)


# ------------------------- banded weight construction (wrapper-side, one-off) ------

def _conv3x3_band_matrices(w_oihw, w_in, w_out, stride):
    """(3, w_in*Cin, w_out*Cout): one banded matmul operand per kernel row dy.

    M[dy, p*Cin+ci, x*Cout+co] = w[co, ci, dy, dx], dx = p - (stride*x - 1) when
    0 <= dx < 3, else 0   (i.e. pad=1 along W and the W-stride folded in).
    """
    co, ci, kh, kw = w_oihw.shape
    k = jnp.transpose(w_oihw, (2, 3, 1, 0)).astype(jnp.float32)        # (kh, kw, ci, co)
    p = jnp.arange(w_in)[:, None]
    x = jnp.arange(w_out)[None, :]
    dx = p - (stride * x - 1)                                          # (w_in, w_out)
    valid = ((dx >= 0) & (dx < kw)).astype(jnp.float32)
    dxc = jnp.clip(dx, 0, kw - 1)
    blocks = k[:, dxc] * valid[None, :, :, None, None]                 # (kh, w_in, w_out, ci, co)
    return jnp.transpose(blocks, (0, 1, 3, 2, 4)).reshape(kh, w_in * ci, w_out * co)


def _conv1x1_band_matrix(w_oi11, w_in, w_out, stride):
    """(w_in*Cin, w_out*Cout) banded matrix for the 1x1 stride-s projection shortcut."""
    co, ci = w_oi11.shape[:2]
    k = w_oi11[:, :, 0, 0].T.astype(jnp.float32)                       # (ci, co)
    p = jnp.arange(w_in)[:, None]
    x = jnp.arange(w_out)[None, :]
    valid = (p == stride * x).astype(jnp.float32)                      # (w_in, w_out)
    blocks = valid[:, :, None, None] * k[None, None]                   # (w_in, w_out, ci, co)
    return jnp.transpose(blocks, (0, 2, 1, 3)).reshape(w_in * ci, w_out * co)


# ----------------------------------- Pallas kernels ---------------------------------

def _main_path(x_ref, s1_ref, o1_ref, m1_ref, s2_ref, o2_ref, m2_ref,
               h1p_ref, h2p_ref, *, bt, h, stride, mxu_dtype):
    """BN1+ReLU -> conv1 -> BN2+ReLU -> conv2 on `bt` stacked images, all in VMEM.

    Returns acc2 (f32); image b's valid output rows are at offset b*(h+2)//stride.
    """
    blk = h + 2
    wc_in = h1p_ref.shape[1]
    wc_mid = h2p_ref.shape[1]
    zrow_in = jnp.zeros((1, wc_in), jnp.float32)
    zrow_mid = jnp.zeros((1, wc_mid), jnp.float32)

    # --- BN1 (folded running stats) + ReLU over the whole (bt*h, W*Cin) slab (f32) ---
    a1 = jnp.maximum(x_ref[...] * s1_ref[...] + o1_ref[...], 0.0)

    # Interleave each image's H-padded block into the stacked scratch.  Pad rows are
    # re-zeroed every step (megacore-safe; see header note 7).
    for b in range(bt):
        h1p_ref[pl.ds(b * blk, 1), :] = zrow_in
        h1p_ref[pl.ds(b * blk + 1, h), :] = a1[b * h:(b + 1) * h]
        h1p_ref[pl.ds(b * blk + h + 1, 1), :] = zrow_in

    # --- conv1 (3x3, stride 1, pad 1): 3 banded MXU matmuls over the whole stack ---
    r1 = bt * blk - 2
    acc1 = jnp.dot(h1p_ref[pl.ds(0, r1), :].astype(mxu_dtype), m1_ref[0],
                   preferred_element_type=jnp.float32)
    for dy in (1, 2):
        acc1 = acc1 + jnp.dot(h1p_ref[pl.ds(dy, r1), :].astype(mxu_dtype), m1_ref[dy],
                              preferred_element_type=jnp.float32)

    # TODO(synk): dropout is eval-mode identity here.

    # --- BN2 + ReLU (conv1 bias folded into o2 wrapper-side).  Rows b*blk..b*blk+h-1
    #     of acc1 are image b's valid conv1 rows; the 2 rows after are cross-image
    #     garbage and are simply never stored. ---
    a2 = jnp.maximum(acc1 * s2_ref[...] + o2_ref[...], 0.0)
    for b in range(bt):
        h2p_ref[pl.ds(b * blk, 1), :] = zrow_mid
        h2p_ref[pl.ds(b * blk + 1, h), :] = a2[b * blk:b * blk + h]
        h2p_ref[pl.ds(b * blk + h + 1, 1), :] = zrow_mid

    # --- conv2 (3x3, stride s, pad 1): 3 banded matmuls; the H-stride is a strided
    #     row read of the scratch (valid rows for image b start at b*blk//stride). ---
    if stride == 1:
        r2 = bt * blk - 2
        rows = lambda dy: h2p_ref[pl.ds(dy, r2), :]
    else:
        r2 = (bt * blk) // stride - 1
        rows = lambda dy: h2p_ref[pl.ds(dy, r2, stride=stride), :]
    acc2 = jnp.dot(rows(0).astype(mxu_dtype), m2_ref[0],
                   preferred_element_type=jnp.float32)
    for dy in (1, 2):
        acc2 = acc2 + jnp.dot(rows(dy).astype(mxu_dtype), m2_ref[dy],
                              preferred_element_type=jnp.float32)
    return acc2


def _wide_basic_proj_kernel(x_ref, s1_ref, o1_ref, m1_ref, s2_ref, o2_ref, m2_ref,
                            msc_ref, bo_ref, o_ref, h1p_ref, h2p_ref,
                            *, bt, h, ho, stride, mxu_dtype):
    acc2 = _main_path(x_ref, s1_ref, o1_ref, m1_ref, s2_ref, o2_ref, m2_ref,
                      h1p_ref, h2p_ref, bt=bt, h=h, stride=stride, mxu_dtype=mxu_dtype)
    blk = h + 2
    m_off = blk // stride
    # Projection shortcut (1x1, stride s): one batched banded matmul on strided raw
    # input rows read directly from x_ref (no separate x_sc stream / HBM gather).
    if stride == 1:
        xs = x_ref[...]
        s_off = h
    else:
        rs = (bt - 1) * (h // stride) + ho
        xs = x_ref[pl.ds(0, rs, stride=stride), :]
        s_off = h // stride
    sc = jnp.dot(xs.astype(mxu_dtype), msc_ref[...], preferred_element_type=jnp.float32)
    bias = bo_ref[...]                                 # conv2_b + sc_b, pre-tiled
    for b in range(bt):
        o_ref[pl.ds(b * ho, ho), :] = (acc2[b * m_off:b * m_off + ho]
                                       + sc[b * s_off:b * s_off + ho] + bias)


def _wide_basic_id_kernel(x_ref, s1_ref, o1_ref, m1_ref, s2_ref, o2_ref, m2_ref,
                          bo_ref, o_ref, h1p_ref, h2p_ref,
                          *, bt, h, ho, stride, mxu_dtype):
    acc2 = _main_path(x_ref, s1_ref, o1_ref, m1_ref, s2_ref, o2_ref, m2_ref,
                      h1p_ref, h2p_ref, bt=bt, h=h, stride=stride, mxu_dtype=mxu_dtype)
    blk = h + 2
    xv = x_ref[...]                                    # identity shortcut, f32 input
    bias = bo_ref[...]                                 # conv2_b, pre-tiled
    for b in range(bt):
        o_ref[pl.ds(b * ho, ho), :] = (acc2[b * blk:b * blk + ho]
                                       + xv[b * h:(b + 1) * h] + bias)


# -------------------------------------- wrapper ------------------------------------

def _pick_batch_tile(n, h, w, cin, planes, ho, wo,
                     budget_bytes=20 * 2**20, max_rows=1024):
    """Largest divisor of n whose per-step activation footprint stays small."""
    best = 1
    for bt in range(1, n + 1):
        if n % bt:
            continue
        est = 4 * bt * (2 * h * w * cin + 2 * ho * wo * planes
                        + (h + 2) * w * (cin + planes))
        if est <= budget_bytes and bt * (h + 2) <= max_rows:
            best = bt
    return best


def wide_basic_forward(x_nchw, params, stride, *, mxu_dtype=jnp.bfloat16,
                       batch_tile=None):
    n, cin, h, w = x_nchw.shape
    planes = params["conv1_w"].shape[0]
    assert stride in (1, 2)
    if stride > 1:
        assert h % stride == 0, "H must be divisible by the stride"
    ho = (h + 2 - 3) // stride + 1
    wo = (w + 2 - 3) // stride + 1

    bt = _pick_batch_tile(n, h, w, cin, planes, ho, wo) if batch_tile is None else batch_tile
    assert n % bt == 0

    # activations as (rows = image rows stacked over batch, lanes = (x, channel))
    xf = jnp.transpose(x_nchw, (0, 2, 3, 1)).astype(jnp.float32).reshape(n * h, w * cin)

    # fold BatchNorm running stats to per-channel scale/bias; fold conv1 bias into o2
    s1 = params["bn1_gamma"] / jnp.sqrt(params["bn1_var"] + BN_EPS)
    o1 = params["bn1_beta"] - params["bn1_mean"] * s1
    s2 = params["bn2_gamma"] / jnp.sqrt(params["bn2_var"] + BN_EPS)
    o2 = params["bn2_beta"] - params["bn2_mean"] * s2 + params["conv1_b"] * s2
    s1f = jnp.tile(s1, w)[None, :].astype(jnp.float32)
    o1f = jnp.tile(o1, w)[None, :].astype(jnp.float32)
    s2f = jnp.tile(s2, w)[None, :].astype(jnp.float32)
    o2f = jnp.tile(o2, w)[None, :].astype(jnp.float32)

    has_proj = "sc_w" in params
    bias_out = params["conv2_b"] + (params["sc_b"] if has_proj else 0.0)
    bof = jnp.tile(bias_out, wo)[None, :].astype(jnp.float32)

    # banded block-Toeplitz conv operands (MXU dtype; f32 if mxu_dtype == float32)
    m1 = _conv3x3_band_matrices(params["conv1_w"], w, w, 1).astype(mxu_dtype)
    m2 = _conv3x3_band_matrices(params["conv2_w"], w, wo, stride).astype(mxu_dtype)

    grid = (n // bt,)
    x_spec = pl.BlockSpec((bt * h, w * cin), lambda i: (i, 0))
    out_spec = pl.BlockSpec((bt * ho, wo * planes), lambda i: (i, 0))
    out_shape = jax.ShapeDtypeStruct((n * ho, wo * planes), jnp.float32)
    scratch = [pltpu.VMEM((bt * (h + 2), w * cin), jnp.float32),     # H-padded BN1+ReLU(x)
               pltpu.VMEM((bt * (h + 2), w * planes), jnp.float32)]  # H-padded BN2+ReLU(conv1)
    cparams = pltpu.CompilerParams(dimension_semantics=("parallel",),
                                   vmem_limit_bytes=32 * 1024 * 1024)

    if has_proj:  # projection shortcut (stride != 1 or in_planes != planes)
        msc = _conv1x1_band_matrix(params["sc_w"], w, wo, stride).astype(mxu_dtype)
        kern = functools.partial(_wide_basic_proj_kernel, bt=bt, h=h, ho=ho,
                                 stride=stride, mxu_dtype=mxu_dtype)
        out2d = pl.pallas_call(
            kern,
            out_shape=out_shape,
            grid=grid,
            in_specs=[x_spec,
                      _const_spec(s1f.shape), _const_spec(o1f.shape), _const_spec(m1.shape),
                      _const_spec(s2f.shape), _const_spec(o2f.shape), _const_spec(m2.shape),
                      _const_spec(msc.shape), _const_spec(bof.shape)],
            out_specs=out_spec,
            scratch_shapes=scratch,
            compiler_params=cparams,
        )(xf, s1f, o1f, m1, s2f, o2f, m2, msc, bof)
    else:  # identity shortcut (stride == 1 and in_planes == planes)
        assert stride == 1 and cin == planes
        kern = functools.partial(_wide_basic_id_kernel, bt=bt, h=h, ho=ho,
                                 stride=stride, mxu_dtype=mxu_dtype)
        out2d = pl.pallas_call(
            kern,
            out_shape=out_shape,
            grid=grid,
            in_specs=[x_spec,
                      _const_spec(s1f.shape), _const_spec(o1f.shape), _const_spec(m1.shape),
                      _const_spec(s2f.shape), _const_spec(o2f.shape), _const_spec(m2.shape),
                      _const_spec(bof.shape)],
            out_specs=out_spec,
            scratch_shapes=scratch,
            compiler_params=cparams,
        )(xf, s1f, o1f, m1, s2f, o2f, m2, bof)

    out = out2d.reshape(n, ho, wo, planes)
    return jnp.transpose(out, (0, 3, 1, 2))                           # back to NCHW


# -------------------------------- params & reference --------------------------------

def init_wide_basic_params(key, in_planes, planes, stride):
    ks = jax.random.split(key, 16)
    f = jnp.float32
    p = {
        "bn1_gamma": 1.0 + 0.1 * jax.random.normal(ks[0], (in_planes,), f),
        "bn1_beta": 0.1 * jax.random.normal(ks[1], (in_planes,), f),
        "bn1_mean": 0.1 * jax.random.normal(ks[2], (in_planes,), f),
        "bn1_var": jax.random.uniform(ks[3], (in_planes,), f, 0.5, 1.5),
        "conv1_w": 0.1 * jax.random.normal(ks[4], (planes, in_planes, 3, 3), f),  # OIHW
        "conv1_b": 0.1 * jax.random.normal(ks[5], (planes,), f),
        "bn2_gamma": 1.0 + 0.1 * jax.random.normal(ks[6], (planes,), f),
        "bn2_beta": 0.1 * jax.random.normal(ks[7], (planes,), f),
        "bn2_mean": 0.1 * jax.random.normal(ks[8], (planes,), f),
        "bn2_var": jax.random.uniform(ks[9], (planes,), f, 0.5, 1.5),
        "conv2_w": 0.1 * jax.random.normal(ks[10], (planes, planes, 3, 3), f),
        "conv2_b": 0.1 * jax.random.normal(ks[11], (planes,), f),
    }
    if stride != 1 or in_planes != planes:
        p["sc_w"] = 0.1 * jax.random.normal(ks[12], (planes, in_planes, 1, 1), f)
        p["sc_b"] = 0.1 * jax.random.normal(ks[13], (planes,), f)
    return p


def reference_forward(x_nchw, params, stride):
    def bn(x, g, b, m, v):
        inv = 1.0 / jnp.sqrt(v + BN_EPS)
        return (x - m[None, :, None, None]) * (g * inv)[None, :, None, None] \
            + b[None, :, None, None]

    def conv(x, w, b, s, pad):
        y = jax.lax.conv_general_dilated(
            x, w, (s, s), ((pad, pad), (pad, pad)),
            dimension_numbers=("NCHW", "OIHW", "NCHW"))
        return y + b[None, :, None, None]

    h = jax.nn.relu(bn(x_nchw, params["bn1_gamma"], params["bn1_beta"],
                       params["bn1_mean"], params["bn1_var"]))
    h = conv(h, params["conv1_w"], params["conv1_b"], 1, 1)
    h = jax.nn.relu(bn(h, params["bn2_gamma"], params["bn2_beta"],
                       params["bn2_mean"], params["bn2_var"]))
    h = conv(h, params["conv2_w"], params["conv2_b"], stride, 1)
    if "sc_w" in params:
        sc = conv(x_nchw, params["sc_w"], params["sc_b"], stride, 0)
    else:
        sc = x_nchw
    return h + sc


# ------------------------------------------ main ------------------------------------

if __name__ == "__main__":
    key = jax.random.PRNGKey(0)
    kx1, kp1, kx2, kp2 = jax.random.split(key, 4)

    probe_single_buffering()  # eager (outside jit) capability check for pl.Buffered(1)

    fwd = jax.jit(wide_basic_forward,
                  static_argnames=("stride", "mxu_dtype", "batch_tile"))

    # Case A: projection shortcut -- WideBasic(in_planes=4, planes=8, stride=2)
    N, Cin, H, W = 2, 4, 16, 16
    planes, stride = 8, 2
    x = jax.random.normal(kx1, (N, Cin, H, W), dtype=jnp.float32)
    params = init_wide_basic_params(kp1, Cin, planes, stride)
    ref = reference_forward(x, params, stride)

    # Case B: identity shortcut -- WideBasic(in_planes=8, planes=8, stride=1)
    x2 = jax.random.normal(kx2, (N, 8, H, W), dtype=jnp.float32)
    params2 = init_wide_basic_params(kp2, 8, 8, 1)
    ref2 = reference_forward(x2, params2, 1)

    # Exact f32 MXU path (tight tolerance) and bf16 MXU path (v5e/v6e/v7x fast path).
    for mxu_dtype, tol in ((jnp.float32, 1e-3), (jnp.bfloat16, 5e-2)):
        out = jax.block_until_ready(fwd(x, params, stride=stride, mxu_dtype=mxu_dtype))
        assert out.shape == (N, planes, H // 2, W // 2), out.shape
        err = float(jnp.max(jnp.abs(out - ref)))
        assert err < tol, f"projection ({mxu_dtype.__name__}) max abs error {err}"

        out2 = jax.block_until_ready(fwd(x2, params2, stride=1, mxu_dtype=mxu_dtype))
        assert out2.shape == (N, 8, H, W), out2.shape
        err2 = float(jnp.max(jnp.abs(out2 - ref2)))
        assert err2 < tol, f"identity ({mxu_dtype.__name__}) max abs error {err2}"

    print("KERNEL_OK")
</pallas_src>

<mosaic_0001>
module attributes {stable_mosaic.version = 11 : i64} {
  func.func @_k(%arg0: i32, %arg1: memref<8x128xf32, #tpu.memory_space<vmem>>, %arg2: memref<8x128xf32, #tpu.memory_space<vmem>>) attributes {dimension_semantics = [#tpu.dimension_semantics<arbitrary>], iteration_bounds = array<i64: 1>, scalar_prefetch = 0 : i64, scratch_operands = 0 : i64, tpu.core_type = #tpu.core_type<tc>, window_params = [{pipeline_mode = #tpu.pipeline_mode<synchronous>, transform_indices = @transform_0, window_bounds = array<i64: 8, 128>}, {pipeline_mode = #tpu.pipeline_mode<synchronous>, transform_indices = @transform_1, window_bounds = array<i64: 8, 128>}]} {
    %c0 = arith.constant 0 : index
    %c0_0 = arith.constant 0 : index
    %0 = vector.load %arg1[%c0, %c0_0] : memref<8x128xf32, #tpu.memory_space<vmem>>, vector<8x128xf32>
    %cst = arith.constant 1.000000e+00 : f32
    %1 = vector.broadcast %cst : f32 to vector<8x128xf32>
    %2 = arith.addf %0, %1 : vector<8x128xf32>
    %c0_1 = arith.constant 0 : index
    %c0_2 = arith.constant 0 : index
    %3 = vector.load %arg2[%c0_1, %c0_2] : memref<8x128xf32, #tpu.memory_space<vmem>>, vector<8x128xf32>
    tpu.vector_store %arg2[%c0_1, %c0_2], %2 {strides = array<i32>} : memref<8x128xf32, #tpu.memory_space<vmem>>, vector<8x128xf32>,
    return
  }
  func.func @transform_0(%arg0: i32) -> (i32, i32) {
    %c0_i32 = arith.constant 0 : i32
    %c0_i32_0 = arith.constant 0 : i32
    %c0_i32_1 = arith.constant 0 : i32
    return %c0_i32, %c0_i32_0 : i32, i32
  }
  func.func @transform_1(%arg0: i32) -> (i32, i32) {
    %c0_i32 = arith.constant 0 : i32
    %c0_i32_0 = arith.constant 0 : i32
    %c0_i32_1 = arith.constant 0 : i32
    return %c0_i32, %c0_i32_0 : i32, i32
  }
}

module attributes {stable_mosaic.version = 11 : i64} {
  func.func @_wide_basic_proj_kernel(%arg0: i32, %arg1: memref<32x64xf32, #tpu.memory_space<vmem>>, %arg2: memref<1x64xf32, #tpu.memory_space<vmem>>, %arg3: memref<1x64xf32, #tpu.memory_space<vmem>>, %arg4: memref<3x64x128xf32, #tpu.memory_space<vmem>>, %arg5: memref<1x128xf32, #tpu.memory_space<vmem>>, %arg6: memref<1x128xf32, #tpu.memory_space<vmem>>, %arg7: memref<3x128x64xf32, #tpu.memory_space<vmem>>, %arg8: memref<64x64xf32, #tpu.memory_space<vmem>>, %arg9: memref<1x64xf32, #tpu.memory_space<vmem>>, %arg10: memref<16x64xf32, #tpu.memory_space<vmem>>, %arg11: memref<36x64xf32, #tpu.memory_space<vmem>>, %arg12: memref<36x128xf32, #tpu.memory_space<vmem>>) attributes {dimension_semantics = [#tpu.dimension_semantics<parallel>], iteration_bounds = array<i64: 1>, scalar_prefetch = 0 : i64, scratch_operands = 2 : i64, tpu.core_type = #tpu.core_type<tc>, window_params = [{transform_indices = @transform_0, window_bounds = array<i64: 32, 64>}, {pipeline_mode = #tpu.pipeline_mode<synchronous>, transform_indices = @transform_1, window_bounds = array<i64: 1, 64>}, {pipeline_mode = #tpu.pipeline_mode<synchronous>, transform_indices = @transform_2, window_bounds = array<i64: 1, 64>}, {pipeline_mode = #tpu.pipeline_mode<synchronous>, transform_indices = @transform_3, window_bounds = array<i64: 3, 64, 128>}, {pipeline_mode = #tpu.pipeline_mode<synchronous>, transform_indices = @transform_4, window_bounds = array<i64: 1, 128>}, {pipeline_mode = #tpu.pipeline_mode<synchronous>, transform_indices = @transform_5, window_bounds = array<i64: 1, 128>}, {pipeline_mode = #tpu.pipeline_mode<synchronous>, transform_indices = @transform_6, window_bounds = array<i64: 3, 128, 64>}, {pipeline_mode = #tpu.pipeline_mode<synchronous>, transform_indices = @transform_7, window_bounds = array<i64: 64, 64>}, {pipeline_mode = #tpu.pipeline_mode<synchronous>, transform_indices = @transform_8, window_bounds = array<i64: 1, 64>}, {transform_indices = @transform_9, window_bounds = array<i64: 16, 64>}]} {
    %cst = arith.constant 0.000000e+00 : f32
    %0 = vector.broadcast %cst : f32 to vector<1x64xf32>
    %cst_0 = arith.constant 0.000000e+00 : f32
    %1 = vector.broadcast %cst_0 : f32 to vector<1x128xf32>
    %c0 = arith.constant 0 : index
    %c0_1 = arith.constant 0 : index
    %2 = vector.load %arg1[%c0, %c0_1] : memref<32x64xf32, #tpu.memory_space<vmem>>, vector<32x64xf32>
    %c0_2 = arith.constant 0 : index
    %c0_3 = arith.constant 0 : index
    %3 = vector.load %arg2[%c0_2, %c0_3] : memref<1x64xf32, #tpu.memory_space<vmem>>, vector<1x64xf32>
    %4 = vector.broadcast %3 : vector<1x64xf32> to vector<32x64xf32>
    %5 = arith.mulf %2, %4 : vector<32x64xf32>
    %c0_4 = arith.constant 0 : index
    %c0_5 = arith.constant 0 : index
    %6 = vector.load %arg3[%c0_4, %c0_5] : memref<1x64xf32, #tpu.memory_space<vmem>>, vector<1x64xf32>
    %7 = vector.broadcast %6 : vector<1x64xf32> to vector<32x64xf32>
    %8 = arith.addf %5, %7 : vector<32x64xf32>
    %cst_6 = arith.constant 0.000000e+00 : f32
    %9 = vector.broadcast %cst_6 : f32 to vector<32x64xf32>
    %10 = arith.maximumf %8, %9 : vector<32x64xf32>
    %c0_7 = arith.constant 0 : index
    %c0_8 = arith.constant 0 : index
    %11 = vector.load %arg11[%c0_7, %c0_8] : memref<36x64xf32, #tpu.memory_space<vmem>>, vector<1x64xf32>
    tpu.vector_store %arg11[%c0_7, %c0_8], %0 {strides = array<i32>} : memref<36x64xf32, #tpu.memory_space<vmem>>, vector<1x64xf32>,
    %12 = vector.extract_strided_slice %10 {offsets = [0, 0], sizes = [16, 64], strides = [1, 1]} : vector<32x64xf32> to vector<16x64xf32>
    %c1 = arith.constant 1 : index
    %c0_9 = arith.constant 0 : index
    %13 = vector.load %arg11[%c1, %c0_9] : memref<36x64xf32, #tpu.memory_space<vmem>>, vector<16x64xf32>
    tpu.vector_store %arg11[%c1, %c0_9], %12 {strides = array<i32>} : memref<36x64xf32, #tpu.memory_space<vmem>>, vector<16x64xf32>,
    %c17 = arith.constant 17 : index
    %c0_10 = arith.constant 0 : index
    %14 = vector.load %arg11[%c17, %c0_10] : memref<36x64xf32, #tpu.memory_space<vmem>>, vector<1x64xf32>
    tpu.vector_store %arg11[%c17, %c0_10], %0 {strides = array<i32>} : memref<36x64xf32, #tpu.memory_space<vmem>>, vector<1x64xf32>,
    %c18 = arith.constant 18 : index
    %c0_11 = arith.constant 0 : index
    %15 = vector.load %arg11[%c18, %c0_11] : memref<36x64xf32, #tpu.memory_space<vmem>>, vector<1x64xf32>
    tpu.vector_store %arg11[%c18, %c0_11], %0 {strides = array<i32>} : memref<36x64xf32, #tpu.memory_space<vmem>>, vector<1x64xf32>,
    %16 = vector.extract_strided_slice %10 {offsets = [16, 0], sizes = [16, 64], strides = [1, 1]} : vector<32x64xf32> to vector<16x64xf32>
    %c19 = arith.constant 19 : index
    %c0_12 = arith.constant 0 : index
    %17 = vector.load %arg11[%c19, %c0_12] : memref<36x64xf32, #tpu.memory_space<vmem>>, vector<16x64xf32>
    tpu.vector_store %arg11[%c19, %c0_12], %16 {strides = array<i32>} : memref<36x64xf32, #tpu.memory_space<vmem>>, vector<16x64xf32>,
    %c35 = arith.constant 35 : index
    %c0_13 = arith.constant 0 : index
    %18 = vector.load %arg11[%c35, %c0_13] : memref<36x64xf32, #tpu.memory_space<vmem>>, vector<1x64xf32>
    tpu.vector_store %arg11[%c35, %c0_13], %0 {strides = array<i32>} : memref<36x64xf32, #tpu.memory_space<vmem>>, vector<1x64xf32>,
    %c0_14 = arith.constant 0 : index
    %c0_15 = arith.constant 0 : index
    %19 = vector.load %arg11[%c0_14, %c0_15] : memref<36x64xf32, #tpu.memory_space<vmem>>, vector<34x64xf32>
    %c0_16 = arith.constant 0 : index
    %c0_17 = arith.constant 0 : index
    %c0_18 = arith.constant 0 : index
    %20 = vector.load %arg4[%c0_16, %c0_17, %c0_18] : memref<3x64x128xf32, #tpu.memory_space<vmem>>, vector<1x64x128xf32>
    %21 = vector.shape_cast %20 : vector<1x64x128xf32> to vector<64x128xf32>
    %cst_19 = arith.constant dense<0.000000e+00> : vector<34x128xf32>
    %22 = tpu.matmul %19, %21, %cst_19 {dimension_numbers = #tpu.dot_dimension_numbers<[1], [0], [0], [1], [0, 0, 1, 1], [], []>} : vector<34x64xf32>, vector<64x128xf32>, vector<34x128xf32> -> vector<34x128xf32>
    %c1_20 = arith.constant 1 : index
    %c0_21 = arith.constant 0 : index
    %23 = vector.load %arg11[%c1_20, %c0_21] : memref<36x64xf32, #tpu.memory_space<vmem>>, vector<34x64xf32>
    %c1_22 = arith.constant 1 : index
    %c0_23 = arith.constant 0 : index
    %c0_24 = arith.constant 0 : index
    %24 = vector.load %arg4[%c1_22, %c0_23, %c0_24] : memref<3x64x128xf32, #tpu.memory_space<vmem>>, vector<1x64x128xf32>
    %25 = vector.shape_cast %24 : vector<1x64x128xf32> to vector<64x128xf32>
    %cst_25 = arith.constant dense<0.000000e+00> : vector<34x128xf32>
    %26 = tpu.matmul %23, %25, %cst_25 {dimension_numbers = #tpu.dot_dimension_numbers<[1], [0], [0], [1], [0, 0, 1, 1], [], []>} : vector<34x64xf32>, vector<64x128xf32>, vector<34x128xf32> -> vector<34x128xf32>
    %27 = arith.addf %22, %26 : vector<34x128xf32>
    %c2 = arith.constant 2 : index
    %c0_26 = arith.constant 0 : index
    %28 = vector.load %arg11[%c2, %c0_26] : memref<36x64xf32, #tpu.memory_space<vmem>>, vector<34x64xf32>
    %c2_27 = arith.constant 2 : index
    %c0_28 = arith.constant 0 : index
    %c0_29 = arith.constant 0 : index
    %29 = vector.load %arg4[%c2_27, %c0_28, %c0_29] : memref<3x64x128xf32, #tpu.memory_space<vmem>>, vector<1x64x128xf32>
    %30 = vector.shape_cast %29 : vector<1x64x128xf32> to vector<64x128xf32>
    %cst_30 = arith.constant dense<0.000000e+00> : vector<34x128xf32>
    %31 = tpu.matmul %28, %30, %cst_30 {dimension_numbers = #tpu.dot_dimension_numbers<[1], [0], [0], [1], [0, 0, 1, 1], [], []>} : vector<34x64xf32>, vector<64x128xf32>, vector<34x128xf32> -> vector<34x128xf32>
    %32 = arith.addf %27, %31 : vector<34x128xf32>
    %c0_31 = arith.constant 0 : index
    %c0_32 = arith.constant 0 : index
    %33 = vector.load %arg5[%c0_31, %c0_32] : memref<1x128xf32, #tpu.memory_space<vmem>>, vector<1x128xf32>
    %34 = vector.broadcast %33 : vector<1x128xf32> to vector<34x128xf32>
    %35 = arith.mulf %32, %34 : vector<34x128xf32>
    %c0_33 = arith.constant 0 : index
    %c0_34 = arith.constant 0 : index
    %36 = vector.load %arg6[%c0_33, %c0_34] : memref<1x128xf32, #tpu.memory_space<vmem>>, vector<1x128xf32>
    %37 = vector.broadcast %36 : vector<1x128xf32> to vector<34x128xf32>
    %38 = arith.addf %35, %37 : vector<34x128xf32>
    %cst_35 = arith.constant 0.000000e+00 : f32
    %39 = vector.broadcast %cst_35 : f32 to vector<34x128xf32>
    %40 = arith.maximumf %38, %39 : vector<34x128xf32>
    %c0_36 = arith.constant 0 : index
    %c0_37 = arith.constant 0 : index
    %41 = vector.load %arg12[%c0_36, %c0_37] : memref<36x128xf32, #tpu.memory_space<vmem>>, vector<1x128xf32>
    tpu.vector_store %arg12[%c0_36, %c0_37], %1 {strides = array<i32>} : memref<36x128xf32, #tpu.memory_space<vmem>>, vector<1x128xf32>,
    %42 = vector.extract_strided_slice %40 {offsets = [0, 0], sizes = [16, 128], strides = [1, 1]} : vector<34x128xf32> to vector<16x128xf32>
    %c1_38 = arith.constant 1 : index
    %c0_39 = arith.constant 0 : index
    %43 = vector.load %arg12[%c1_38, %c0_39] : memref<36x128xf32, #tpu.memory_space<vmem>>, vector<16x128xf32>
    tpu.vector_store %arg12[%c1_38, %c0_39], %42 {strides = array<i32>} : memref<36x128xf32, #tpu.memory_space<vmem>>, vector<16x128xf32>,
    %c17_40 = arith.constant 17 : index
    %c0_41 = arith.constant 0 : index
    %44 = vector.load %arg12[%c17_40, %c0_41] : memref<36x128xf32, #tpu.memory_space<vmem>>, vector<1x128xf32>
    tpu.vector_store %arg12[%c17_40, %c0_41], %1 {strides = array<i32>} : memref<36x128xf32, #tpu.memory_space<vmem>>, vector<1x128xf32>,
    %c18_42 = arith.constant 18 : index
    %c0_43 = arith.constant 0 : index
    %45 = vector.load %arg12[%c18_42, %c0_43] : memref<36x128xf32, #tpu.memory_space<vmem>>, vector<1x128xf32>
    tpu.vector_store %arg12[%c18_42, %c0_43], %1 {strides = array<i32>} : memref<36x128xf32, #tpu.memory_space<vmem>>, vector<1x128xf32>,
    %46 = vector.extract_strided_slice %40 {offsets = [18, 0], sizes = [16, 128], strides = [1, 1]} : vector<34x128xf32> to vector<16x128xf32>
    %c19_44 = arith.constant 19 : index
    %c0_45 = arith.constant 0 : index
    %47 = vector.load %arg12[%c19_44, %c0_45] : memref<36x128xf32, #tpu.memory_space<vmem>>, vector<16x128xf32>
    tpu.vector_store %arg12[%c19_44, %c0_45], %46 {strides = array<i32>} : memref<36x128xf32, #tpu.memory_space<vmem>>, vector<16x128xf32>,
    %c35_46 = arith.constant 35 : index
    %c0_47 = arith.constant 0 : index
    %48 = vector.load %arg12[%c35_46, %c0_47] : memref<36x128xf32, #tpu.memory_space<vmem>>, vector<1x128xf32>
    tpu.vector_store %arg12[%c35_46, %c0_47], %1 {strides = array<i32>} : memref<36x128xf32, #tpu.memory_space<vmem>>, vector<1x128xf32>,
    %c0_48 = arith.constant 0 : index
    %c0_49 = arith.constant 0 : index
    %49 = tpu.strided_load %arg12[%c0_48, %c0_49] {strides = array<i32: 2, 1>} : memref<36x128xf32, #tpu.memory_space<vmem>>, vector<17x128xf32>
    %c0_50 = arith.constant 0 : index
    %c0_51 = arith.constant 0 : index
    %c0_52 = arith.constant 0 : index
    %50 = vector.load %arg7[%c0_50, %c0_51, %c0_52] : memref<3x128x64xf32, #tpu.memory_space<vmem>>, vector<1x128x64xf32>
    %51 = vector.shape_cast %50 : vector<1x128x64xf32> to vector<128x64xf32>
    %cst_53 = arith.constant dense<0.000000e+00> : vector<17x64xf32>
    %52 = tpu.matmul %49, %51, %cst_53 {dimension_numbers = #tpu.dot_dimension_numbers<[1], [0], [0], [1], [0, 0, 1, 1], [], []>} : vector<17x128xf32>, vector<128x64xf32>, vector<17x64xf32> -> vector<17x64xf32>
    %c1_54 = arith.constant 1 : index
    %c0_55 = arith.constant 0 : index
    %53 = tpu.strided_load %arg12[%c1_54, %c0_55] {strides = array<i32: 2, 1>} : memref<36x128xf32, #tpu.memory_space<vmem>>, vector<17x128xf32>
    %c1_56 = arith.constant 1 : index
    %c0_57 = arith.constant 0 : index
    %c0_58 = arith.constant 0 : index
    %54 = vector.load %arg7[%c1_56, %c0_57, %c0_58] : memref<3x128x64xf32, #tpu.memory_space<vmem>>, vector<1x128x64xf32>
    %55 = vector.shape_cast %54 : vector<1x128x64xf32> to vector<128x64xf32>
    %cst_59 = arith.constant dense<0.000000e+00> : vector<17x64xf32>
    %56 = tpu.matmul %53, %55, %cst_59 {dimension_numbers = #tpu.dot_dimension_numbers<[1], [0], [0], [1], [0, 0, 1, 1], [], []>} : vector<17x128xf32>, vector<128x64xf32>, vector<17x64xf32> -> vector<17x64xf32>
    %57 = arith.addf %52, %56 : vector<17x64xf32>
    %c2_60 = arith.constant 2 : index
    %c0_61 = arith.constant 0 : index
    %58 = tpu.strided_load %arg12[%c2_60, %c0_61] {strides = array<i32: 2, 1>} : memref<36x128xf32, #tpu.memory_space<vmem>>, vector<17x128xf32>
    %c2_62 = arith.constant 2 : index
    %c0_63 = arith.constant 0 : index
    %c0_64 = arith.constant 0 : index
    %59 = vector.load %arg7[%c2_62, %c0_63, %c0_64] : memref<3x128x64xf32, #tpu.memory_space<vmem>>, vector<1x128x64xf32>
    %60 = vector.shape_cast %59 : vector<1x128x64xf32> to vector<128x64xf32>
    %cst_65 = arith.constant dense<0.000000e+00> : vector<17x64xf32>
    %61 = tpu.matmul %58, %60, %cst_65 {dimension_numbers = #tpu.dot_dimension_numbers<[1], [0], [0], [1], [0, 0, 1, 1], [], []>} : vector<17x128xf32>, vector<128x64xf32>, vector<17x64xf32> -> vector<17x64xf32>
    %62 = arith.addf %57, %61 : vector<17x64xf32>
    %c0_66 = arith.constant 0 : index
    %c0_67 = arith.constant 0 : index
    %63 = tpu.strided_load %arg1[%c0_66, %c0_67] {strides = array<i32: 2, 1>} : memref<32x64xf32, #tpu.memory_space<vmem>>, vector<16x64xf32>
    %c0_68 = arith.constant 0 : index
    %c0_69 = arith.constant 0 : index
    %64 = vector.load %arg8[%c0_68, %c0_69] : memref<64x64xf32, #tpu.memory_space<vmem>>, vector<64x64xf32>
    %cst_70 = arith.constant dense<0.000000e+00> : vector<16x64xf32>
    %65 = tpu.matmul %63, %64, %cst_70 {dimension_numbers = #tpu.dot_dimension_numbers<[1], [0], [0], [1], [0, 0, 1, 1], [], []>} : vector<16x64xf32>, vector<64x64xf32>, vector<16x64xf32> -> vector<16x64xf32>
    %c0_71 = arith.constant 0 : index
    %c0_72 = arith.constant 0 : index
    %66 = vector.load %arg9[%c0_71, %c0_72] : memref<1x64xf32, #tpu.memory_space<vmem>>, vector<1x64xf32>
    %67 = vector.extract_strided_slice %62 {offsets = [0, 0], sizes = [8, 64], strides = [1, 1]} : vector<17x64xf32> to vector<8x64xf32>
    %68 = vector.extract_strided_slice %65 {offsets = [0, 0], sizes = [8, 64], strides = [1, 1]} : vector<16x64xf32> to vector<8x64xf32>
    %69 = arith.addf %67, %68 : vector<8x64xf32>
    %70 = vector.broadcast %66 : vector<1x64xf32> to vector<8x64xf32>
    %71 = arith.addf %69, %70 : vector<8x64xf32>
    %c0_73 = arith.constant 0 : index
    %c0_74 = arith.constant 0 : index
    %72 = vector.load %arg10[%c0_73, %c0_74] : memref<16x64xf32, #tpu.memory_space<vmem>>, vector<8x64xf32>
    tpu.vector_store %arg10[%c0_73, %c0_74], %71 {strides = array<i32>} : memref<16x64xf32, #tpu.memory_space<vmem>>, vector<8x64xf32>,
    %73 = vector.extract_strided_slice %62 {offsets = [9, 0], sizes = [8, 64], strides = [1, 1]} : vector<17x64xf32> to vector<8x64xf32>
    %74 = vector.extract_strided_slice %65 {offsets = [8, 0], sizes = [8, 64], strides = [1, 1]} : vector<16x64xf32> to vector<8x64xf32>
    %75 = arith.addf %73, %74 : vector<8x64xf32>
    %76 = vector.broadcast %66 : vector<1x64xf32> to vector<8x64xf32>
    %77 = arith.addf %75, %76 : vector<8x64xf32>
    %c8 = arith.constant 8 : index
    %c0_75 = arith.constant 0 : index
    %78 = vector.load %arg10[%c8, %c0_75] : memref<16x64xf32, #tpu.memory_space<vmem>>, vector<8x64xf32>
    tpu.vector_store %arg10[%c8, %c0_75], %77 {strides = array<i32>} : memref<16x64xf32, #tpu.memory_space<vmem>>, vector<8x64xf32>,
    return
  }
  func.func @transform_0(%arg0: i32) -> (i32, i32) {
    %c0_i32 = arith.constant 0 : i32
    %c0_i32_0 = arith.constant 0 : i32
    return %arg0, %c0_i32 : i32, i32
  }
  func.func @transform_1(%arg0: i32) -> (i32, i32) {
    %c0_i32 = arith.constant 0 : i32
    %c0_i32_0 = arith.constant 0 : i32
    %c0_i32_1 = arith.constant 0 : i32
    return %c0_i32, %c0_i32_0 : i32, i32
  }
  func.func @transform_2(%arg0: i32) -> (i32, i32) {
    %c0_i32 = arith.constant 0 : i32
    %c0_i32_0 = arith.constant 0 : i32
    %c0_i32_1 = arith.constant 0 : i32
    return %c0_i32, %c0_i32_0 : i32, i32
  }
  func.func @transform_3(%arg0: i32) -> (i32, i32, i32) {
    %c0_i32 = arith.constant 0 : i32
    %c0_i32_0 = arith.constant 0 : i32
    %c0_i32_1 = arith.constant 0 : i32
    %c0_i32_2 = arith.constant 0 : i32
    return %c0_i32, %c0_i32_0, %c0_i32_1 : i32, i32, i32
  }
  func.func @transform_4(%arg0: i32) -> (i32, i32) {
    %c0_i32 = arith.constant 0 : i32
    %c0_i32_0 = arith.constant 0 : i32
    %c0_i32_1 = arith.constant 0 : i32
    return %c0_i32, %c0_i32_0 : i32, i32
  }
  func.func @transform_5(%arg0: i32) -> (i32, i32) {
    %c0_i32 = arith.constant 0 : i32
    %c0_i32_0 = arith.constant 0 : i32
    %c0_i32_1 = arith.constant 0 : i32
    return %c0_i32, %c0_i32_0 : i32, i32
  }
  func.func @transform_6(%arg0: i32) -> (i32, i32, i32) {
    %c0_i32 = arith.constant 0 : i32
    %c0_i32_0 = arith.constant 0 : i32
    %c0_i32_1 = arith.constant 0 : i32
    %c0_i32_2 = arith.constant 0 : i32
    return %c0_i32, %c0_i32_0, %c0_i32_1 : i32, i32, i32
  }
  func.func @transform_7(%arg0: i32) -> (i32, i32) {
    %c0_i32 = arith.constant 0 : i32
    %c0_i32_0 = arith.constant 0 : i32
    %c0_i32_1 = arith.constant 0 : i32
    return %c0_i32, %c0_i32_0 : i32, i32
  }
  func.func @transform_8(%arg0: i32) -> (i32, i32) {
    %c0_i32 = arith.constant 0 : i32
    %c0_i32_0 = arith.constant 0 : i32
    %c0_i32_1 = arith.constant 0 : i32
    return %c0_i32, %c0_i32_0 : i32, i32
  }
  func.func @transform_9(%arg0: i32) -> (i32, i32) {
    %c0_i32 = arith.constant 0 : i32
    %c0_i32_0 = arith.constant 0 : i32
    return %arg0, %c0_i32 : i32, i32
  }
}

</mosaic_0001>

<bundles_post_ra>
// kernel: tpu_custom_call.1
= control target key start
LH: loop header
LB: loop body
LE: loop exit
PB: predicated region body
PF: predicated region fallthrough
CT: control target
= control target key end

     0   :  { %6 = vsyncpa [#allocation3], 0  ;;  %s103_s0 = inlined_call_operand.hbm [shape: f32[8,128], index: 0, kind: input, shape index: {}]   ;;  %s104_s1 = inlined_call_operand.hbm [shape: f32[8,128], index: 1, kind: output, shape index: {}]  }
   0x1   :  { %7 = vsyncpa [#allocation4], 0  ;;  %s85_s6 = smov [#allocation2]  }
   0x2   :  { %s14_s7 = sshll.u32 %s85_s6, 4  ;;  %s15_s7 = int_to_ptr.vmem [resolvable:$true] %s14_s7 }
   0x3   :  { %s49_s8 = scalar_lea.vmem %s15_s7, 128  ;;  %p54_p1 = scmp.lt.s32.totalorder %s15_s7, %s15_s7 }
   0x4   :  { %p50_p0 = scmp.ne.s32.totalorder %s15_s7, %s49_s8  ;;  %p55_p2 = scmp.lt.s32.totalorder %s49_s8, %s49_s8 }
   0x6   :  { %p56_p3 = por %p55_p2, %p54_p1 }
   0x8   :  { %p57_p4 = pnand %p56_p3, %p50_p0 }
   0xa   :  { %60 = shalt.err (!%p57_p4)
}
   0xb   :  { %17 = dma.hbm_to_vmem [thread:$0]  %s103_s0, 128, %s15_s7, [#allocation3]  }
   0xc   :  { %81 = dma.done.wait [#allocation3], 128  }
   0xd   :  { %82 = vsyncadd [#allocation3], 4294967168  ;;  %s86_s11 = smov [#allocation5]   ;;  %v21_v0 = vld [vmem:[#allocation2] sm:$0xff] }
   0xe   :  { %s30_s12 = sshll.u32 %s86_s11, 4  ;;  %v22_v1 = vadd.f32 1.0, %v21_v0  ;;  %s31_s12 = int_to_ptr.vmem [resolvable:$true] %s30_s12 }
   0xf   :  { %s61_s13 = scalar_lea.vmem %s31_s12, 128  ;;  %p66_p6 = scmp.lt.s32.totalorder %s31_s12, %s31_s12 }
  0x10   :  { %23 = vst [vmem:[#allocation5] sm:$0xff] %v22_v1  ;;  %p62_p5 = scmp.ne.s32.totalorder %s31_s12, %s61_s13  ;;  %p67_p7 = scmp.lt.s32.totalorder %s61_s13, %s61_s13 }
  0x12   :  { %p68_p8 = por %p67_p7, %p66_p6 }
  0x14   :  { %p69_p9 = pnand %p68_p8, %p62_p5 }
  0x16   :  { %72 = shalt.err (!%p69_p9)
}
  0x17   :  { %33 = dma.vmem_to_hbm [thread:$0]  %s31_s12, 128, %s104_s1, [#allocation4]  }
  0x18   :  { %83 = dma.done.wait [#allocation4], 128  }
  0x19   :  { %84 = vsyncadd [#allocation4], 4294967168 }
  0x1a   :  { %37 = vsyncpa [#allocation3], 1 }
  0x1b   :  { %38 = vsyncpa [#allocation4], 1 }

// kernel: tile.28
= control target key start
LH: loop header
LB: loop body
LE: loop exit
PB: predicated region body
PF: predicated region fallthrough
CT: control target
= control target key end

     0   :  { %s28_s0 = inlined_call_operand.vmem [shape: f32[4], index: 0, kind: input, shape index: {}]   ;;  %s29_s1 = inlined_call_operand.vmem [shape: f32[16,4], index: 1, kind: output, shape index: {}]  }
   0x1   :  { %v4_v0 = vld [vmem:[%s28_s0] ss:$0 sm:$0xff] }
   0x2   :  { %5 = vst [vmem:[%s29_s1] sm:$0xff] %v4_v0  ;;  %8 = vst [vmem:[%s29_s1 + $0x8] sm:$0xff] %v4_v0 }

// kernel: tile.29
= control target key start
LH: loop header
LB: loop body
LE: loop exit
PB: predicated region body
PF: predicated region fallthrough
CT: control target
= control target key end

     0   :  { %s133_s10 = smov 60   ;;  %s134_s11 = smov 52   ;;  %vm3_vm0 = vcmask 31744   ;;  %vm9_vm1 = vcmask 523744   ;;  %vm15_vm2 = vcmask 490944   ;;  %vm21_vm3 = vcmask 458144   ;;  %s209_s0 = inlined_call_operand.vmem [shape: f32[16,4], index: 0, kind: input, shape index: {}]   ;;  %s210_s1 = inlined_call_operand.vmem [shape: f32[1,64], index: 1, kind: output, shape index: {}]  }
   0x1   :  { %v103_v0 = vld [vmem:[%s209_s0 + $0xf] sm:$0x1]   ;;  %v105_v1 = vld [vmem:[%s209_s0 + $0xd] sm:$0x1]   ;;  %v104_v2 = vld [vmem:[%s209_s0 + $0xe] sm:$0x1]  }
   0x2   :  { %7 = vrot.lane.b32.xlu0 %v103_v0, %s133_s10  ;;  %19 = vrot.lane.b32.xlu1 %v105_v1, %s134_s11  ;;  %v106_v3 = vld [vmem:[%s209_s0 + $0xc] sm:$0x1]   ;;  %s135_s16 = smov 56   ;;  %s136_s17 = smov 48   ;;  %v107_v4 = vld [vmem:[%s209_s0 + $0xb] sm:$0x1]  }
   0x3   :  { %v108_v5 = vld [vmem:[%s209_s0 + $0xa] sm:$0x1]   ;;  %v2_v6 = vld [vmem:[%s209_s0] sm:$0x1]   ;;  %s137_s24 = smov 44   ;;  %s138_s25 = smov 40  }
   0x4   :  { %4 = vst.msk [vmem:[#allocation0] sm:$0x1] %vm3_vm0, %v2_v6   ;;  %v109_v7 = vld [vmem:[%s209_s0 + $0x9] sm:$0x1]   ;;  %v110_v8 = vld [vmem:[%s209_s0 + $0x8] sm:$0x1]  }
   0x5   :  { %s139_s30 = smov 36   ;;  %s140_s2 = smov 32   ;;  %v111_v9 = vld [vmem:[%s209_s0 + $0x7] sm:$0x1]   ;;  %v112_v10 = vld [vmem:[%s209_s0 + $0x6] sm:$0x1]  }
   0x6   :  { %13 = vrot.lane.b32.xlu0 %v104_v2, %s135_s16  ;;  %25 = vrot.lane.b32.xlu1 %v106_v3, %s136_s17  ;;  %s141_s7 = smov 28   ;;  %s142_s8 = smov 24   ;;  %v113_v11 = vld [vmem:[%s209_s0 + $0x5] sm:$0x1]   ;;  %v114_v12 = vld [vmem:[%s209_s0 + $0x4] sm:$0x1]  }
   0x7   :  { %s143_s13 = smov 20   ;;  %s144_s14 = smov 16   ;;  %v115_v13 = vld [vmem:[%s209_s0 + $0x3] sm:$0x1]   ;;  %v116_v14 = vld [vmem:[%s209_s0 + $0x2] sm:$0x1]  }
   0x8   :  { %s145_s19 = smov 12   ;;  %s146_s20 = smov 8   ;;  %v117_v15 = vld [vmem:[%s209_s0 + $0x1] sm:$0x1]   ;;  %vm27_vm4 = vcmask 425344   ;;  %vm33_vm5 = vcmask 392544  }
   0x9   :  { %s147_s0 = smov 4   ;;  %vm39_vm6 = vcmask 359744   ;;  %vm45_vm7 = vcmask 326944   ;;  %vm51_vm8 = vcmask 294144   ;;  %vm57_vm9 = vcmask 261344  }
   0xa   :  { %31 = vrot.lane.b32.xlu0 %v107_v4, %s137_s24  ;;  %37 = vrot.lane.b32.xlu1 %v108_v5, %s138_s25  ;;  %vm63_vm10 = vcmask 228544   ;;  %vm69_vm11 = vcmask 195744   ;;  %vm75_vm12 = vcmask 162944   ;;  %vm81_vm13 = vcmask 130144  }
   0xb   :  { %vm87_vm14 = vcmask 97344   ;;  %vm93_vm15 = vcmask 64544  }
   0xe   :  { %43 = vrot.lane.b32.xlu0 %v109_v7, %s139_s30  ;;  %49 = vrot.lane.b32.xlu1 %v110_v8, %s140_s2 }
  0x12   :  { %55 = vrot.lane.b32.xlu0 %v111_v9, %s141_s7  ;;  %61 = vrot.lane.b32.xlu1 %v112_v10, %s142_s8 }
  0x16   :  { %67 = vrot.lane.b32.xlu0 %v113_v11, %s143_s13  ;;  %73 = vrot.lane.b32.xlu1 %v114_v12, %s144_s14 }
  0x1a   :  { %79 = vrot.lane.b32.xlu0 %v115_v13, %s145_s19  ;;  %85 = vrot.lane.b32.xlu1 %v116_v14, %s146_s20 }
  0x1e   :  { %91 = vrot.lane.b32.xlu0 %v117_v15, %s147_s0 }
  0x74   :  { %v8_v16 = vpop.permute.xlu0 %7   ;;  %v20_v17 = vpop.permute.xlu1 %19  }
  0x75   :  { %10 = vst.msk [vmem:[#allocation0] sm:$0x1] %vm9_vm1, %v8_v16  }
  0x78   :  { %v14_v18 = vpop.permute.xlu0 %13   ;;  %v26_v19 = vpop.permute.xlu1 %25  }
  0x79   :  { %16 = vst.msk [vmem:[#allocation0] sm:$0x1] %vm15_vm2, %v14_v18  }
  0x7a   :  { %22 = vst.msk [vmem:[#allocation0] sm:$0x1] %vm21_vm3, %v20_v17  }
  0x7b   :  { %28 = vst.msk [vmem:[#allocation0] sm:$0x1] %vm27_vm4, %v26_v19  }
  0x7c   :  { %v32_v20 = vpop.permute.xlu0 %31   ;;  %v38_v21 = vpop.permute.xlu1 %37  }
  0x7d   :  { %34 = vst.msk [vmem:[#allocation0] sm:$0x1] %vm33_vm5, %v32_v20  }
  0x7e   :  { %40 = vst.msk [vmem:[#allocation0] sm:$0x1] %vm39_vm6, %v38_v21  }
  0x80   :  { %v44_v22 = vpop.permute.xlu0 %43   ;;  %v50_v23 = vpop.permute.xlu1 %49  }
  0x81   :  { %46 = vst.msk [vmem:[#allocation0] sm:$0x1] %vm45_vm7, %v44_v22  }
  0x82   :  { %52 = vst.msk [vmem:[#allocation0] sm:$0x1] %vm51_vm8, %v50_v23  }
  0x84   :  { %v56_v24 = vpop.permute.xlu0 %55   ;;  %v62_v25 = vpop.permute.xlu1 %61  }
  0x85   :  { %58 = vst.msk [vmem:[#allocation0] sm:$0x1] %vm57_vm9, %v56_v24  }
  0x86   :  { %64 = vst.msk [vmem:[#allocation0] sm:$0x1] %vm63_vm10, %v62_v25  }
  0x88   :  { %v68_v26 = vpop.permute.xlu0 %67   ;;  %v74_v27 = vpop.permute.xlu1 %73  }
  0x89   :  { %70 = vst.msk [vmem:[#allocation0] sm:$0x1] %vm69_vm11, %v68_v26  }
  0x8a   :  { %76 = vst.msk [vmem:[#allocation0] sm:$0x1] %vm75_vm12, %v74_v27  }
  0x8c   :  { %v80_v28 = vpop.permute.xlu0 %79   ;;  %v86_v29 = vpop.permute.xlu1 %85  }
  0x8d   :  { %82 = vst.msk [vmem:[#allocation0] sm:$0x1] %vm81_vm13, %v80_v28  }
  0x8e   :  { %88 = vst.msk [vmem:[#allocation0] sm:$0x1] %vm87_vm14, %v86_v29  }
  0x90   :  { %v92_v30 = vpop.permute.xlu0 %91  }
  0x91   :  { %94 = vst.msk [vmem:[#allocation0] sm:$0x1] %vm93_vm15, %v92_v30  }
  0x98   :  { %v99_v31 = vld [vmem:[#allocation0] sm:$0x1] }
  0x99   :  { %102 = vst [vmem:[%s210_s1] sm:$0x1] %v99_v31 }

// kernel: tile.38
= control target key start
LH: loop header
LB: loop body
LE: loop exit
PB: predicated region body
PF: predicated region fallthrough
CT: control target
= control target key end

     0   :  { %s28_s0 = inlined_call_operand.vmem [shape: f32[8], index: 0, kind: input, shape index: {}]   ;;  %s29_s1 = inlined_call_operand.vmem [shape: f32[16,8], index: 1, kind: output, shape index: {}]  }
   0x1   :  { %v4_v0 = vld [vmem:[%s28_s0] ss:$0 sm:$0xff] }
   0x2   :  { %5 = vst [vmem:[%s29_s1] sm:$0xff] %v4_v0  ;;  %8 = vst [vmem:[%s29_s1 + $0x8] sm:$0xff] %v4_v0 }

// kernel: tile.39
= control target key start
LH: loop header
LB: loop body
LE: loop exit
PB: predicated region body
PF: predicated region fallthrough
CT: control target
= control target key end

     0   :  { %s133_s10 = smov 120   ;;  %s134_s11 = smov 104   ;;  %vm3_vm0 = vcmask 64512   ;;  %vm9_vm1 = vcmask 1048512   ;;  %vm15_vm2 = vcmask 982912   ;;  %vm21_vm3 = vcmask 917312   ;;  %s209_s0 = inlined_call_operand.vmem [shape: f32[16,8], index: 0, kind: input, shape index: {}]   ;;  %s210_s1 = inlined_call_operand.vmem [shape: f32[1,128], index: 1, kind: output, shape index: {}]  }
   0x1   :  { %v103_v0 = vld [vmem:[%s209_s0 + $0xf] sm:$0x1]   ;;  %v105_v1 = vld [vmem:[%s209_s0 + $0xd] sm:$0x1]   ;;  %v104_v2 = vld [vmem:[%s209_s0 + $0xe] sm:$0x1]  }
   0x2   :  { %7 = vrot.lane.b32.xlu0 %v103_v0, %s133_s10  ;;  %19 = vrot.lane.b32.xlu1 %v105_v1, %s134_s11  ;;  %v106_v3 = vld [vmem:[%s209_s0 + $0xc] sm:$0x1]   ;;  %s135_s16 = smov 112   ;;  %s136_s17 = smov 96   ;;  %v107_v4 = vld [vmem:[%s209_s0 + $0xb] sm:$0x1]  }
   0x3   :  { %v108_v5 = vld [vmem:[%s209_s0 + $0xa] sm:$0x1]   ;;  %v2_v6 = vld [vmem:[%s209_s0] sm:$0x1]   ;;  %s137_s24 = smov 88   ;;  %s138_s25 = smov 80  }
   0x4   :  { %4 = vst.msk [vmem:[#allocation0] sm:$0x1] %vm3_vm0, %v2_v6   ;;  %v109_v7 = vld [vmem:[%s209_s0 + $0x9] sm:$0x1]   ;;  %v110_v8 = vld [vmem:[%s209_s0 + $0x8] sm:$0x1]  }
   0x5   :  { %s139_s30 = smov 72   ;;  %s140_s2 = smov 64   ;;  %v111_v9 = vld [vmem:[%s209_s0 + $0x7] sm:$0x1]   ;;  %v112_v10 = vld [vmem:[%s209_s0 + $0x6] sm:$0x1]  }
   0x6   :  { %13 = vrot.lane.b32.xlu0 %v104_v2, %s135_s16  ;;  %25 = vrot.lane.b32.xlu1 %v106_v3, %s136_s17  ;;  %s141_s7 = smov 56   ;;  %s142_s8 = smov 48   ;;  %v113_v11 = vld [vmem:[%s209_s0 + $0x5] sm:$0x1]   ;;  %v114_v12 = vld [vmem:[%s209_s0 + $0x4] sm:$0x1]  }
   0x7   :  { %s143_s13 = smov 40   ;;  %s144_s14 = smov 32   ;;  %v115_v13 = vld [vmem:[%s209_s0 + $0x3] sm:$0x1]   ;;  %v116_v14 = vld [vmem:[%s209_s0 + $0x2] sm:$0x1]  }
   0x8   :  { %s145_s19 = smov 24   ;;  %s146_s20 = smov 16   ;;  %v117_v15 = vld [vmem:[%s209_s0 + $0x1] sm:$0x1]   ;;  %vm27_vm4 = vcmask 851712   ;;  %vm33_vm5 = vcmask 786112  }
   0x9   :  { %s147_s0 = smov 8   ;;  %vm39_vm6 = vcmask 720512   ;;  %vm45_vm7 = vcmask 654912   ;;  %vm51_vm8 = vcmask 589312   ;;  %vm57_vm9 = vcmask 523712  }
   0xa   :  { %31 = vrot.lane.b32.xlu0 %v107_v4, %s137_s24  ;;  %37 = vrot.lane.b32.xlu1 %v108_v5, %s138_s25  ;;  %vm63_vm10 = vcmask 458112   ;;  %vm69_vm11 = vcmask 392512   ;;  %vm75_vm12 = vcmask 326912   ;;  %vm81_vm13 = vcmask 261312  }
   0xb   :  { %vm87_vm14 = vcmask 195712   ;;  %vm93_vm15 = vcmask 130112  }
   0xe   :  { %43 = vrot.lane.b32.xlu0 %v109_v7, %s139_s30  ;;  %49 = vrot.lane.b32.xlu1 %v110_v8, %s140_s2 }
  0x12   :  { %55 = vrot.lane.b32.xlu0 %v111_v9, %s141_s7  ;;  %61 = vrot.lane.b32.xlu1 %v112_v10, %s142_s8 }
  0x16   :  { %67 = vrot.lane.b32.xlu0 %v113_v11, %s143_s13  ;;  %73 = vrot.lane.b32.xlu1 %v114_v12, %s144_s14 }
  0x1a   :  { %79 = vrot.lane.b32.xlu0 %v115_v13, %s145_s19  ;;  %85 = vrot.lane.b32.xlu1 %v116_v14, %s146_s20 }
  0x1e   :  { %91 = vrot.lane.b32.xlu0 %v117_v15, %s147_s0 }
  0x74   :  { %v8_v16 = vpop.permute.xlu0 %7   ;;  %v20_v17 = vpop.permute.xlu1 %19  }
  0x75   :  { %10 = vst.msk [vmem:[#allocation0] sm:$0x1] %vm9_vm1, %v8_v16  }
  0x78   :  { %v14_v18 = vpop.permute.xlu0 %13   ;;  %v26_v19 = vpop.permute.xlu1 %25  }
  0x79   :  { %16 = vst.msk [vmem:[#allocation0] sm:$0x1] %vm15_vm2, %v14_v18  }
  0x7a   :  { %22 = vst.msk [vmem:[#allocation0] sm:$0x1] %vm21_vm3, %v20_v17  }
  0x7b   :  { %28 = vst.msk [vmem:[#allocation0] sm:$0x1] %vm27_vm4, %v26_v19  }
  0x7c   :  { %v32_v20 = vpop.permute.xlu0 %31   ;;  %v38_v21 = vpop.permute.xlu1 %37  }
  0x7d   :  { %34 = vst.msk [vmem:[#allocation0] sm:$0x1] %vm33_vm5, %v32_v20  }
  0x7e   :  { %40 = vst.msk [vmem:[#allocation0] sm:$0x1] %vm39_vm6, %v38_v21  }
  0x80   :  { %v44_v22 = vpop.permute.xlu0 %43   ;;  %v50_v23 = vpop.permute.xlu1 %49  }
  0x81   :  { %46 = vst.msk [vmem:[#allocation0] sm:$0x1] %vm45_vm7, %v44_v22  }
  0x82   :  { %52 = vst.msk [vmem:[#allocation0] sm:$0x1] %vm51_vm8, %v50_v23  }
  0x84   :  { %v56_v24 = vpop.permute.xlu0 %55   ;;  %v62_v25 = vpop.permute.xlu1 %61  }
  0x85   :  { %58 = vst.msk [vmem:[#allocation0] sm:$0x1] %vm57_vm9, %v56_v24  }
  0x86   :  { %64 = vst.msk [vmem:[#allocation0] sm:$0x1] %vm63_vm10, %v62_v25  }
  0x88   :  { %v68_v26 = vpop.permute.xlu0 %67   ;;  %v74_v27 = vpop.permute.xlu1 %73  }
  0x89   :  { %70 = vst.msk [vmem:[#allocation0] sm:$0x1] %vm69_vm11, %v68_v26  }
  0x8a   :  { %76 = vst.msk [vmem:[#allocation0] sm:$0x1] %vm75_vm12, %v74_v27  }
  0x8c   :  { %v80_v28 = vpop.permute.xlu0 %79   ;;  %v86_v29 = vpop.permute.xlu1 %85  }
  0x8d   :  { %82 = vst.msk [vmem:[#allocation0] sm:$0x1] %vm81_vm13, %v80_v28  }
  0x8e   :  { %88 = vst.msk [vmem:[#allocation0] sm:$0x1] %vm87_vm14, %v86_v29  }
  0x90   :  { %v92_v30 = vpop.permute.xlu0 %91  }
  0x91   :  { %94 = vst.msk [vmem:[#allocation0] sm:$0x1] %vm93_vm15, %v92_v30  }
  0x98   :  { %v99_v31 = vld [vmem:[#allocation0] sm:$0x1] }
  0x99   :  { %102 = vst [vmem:[%s210_s1] sm:$0x1] %v99_v31 }

// kernel: tile.48
= control target key start
LH: loop header
LB: loop body
LE: loop exit
PB: predicated region body
PF: predicated region fallthrough
CT: control target
= control target key end

     0   :  { %s22_s0 = inlined_call_operand.vmem [shape: f32[8], index: 0, kind: input, shape index: {}]   ;;  %s23_s1 = inlined_call_operand.vmem [shape: f32[8,8], index: 1, kind: output, shape index: {}]  }
   0x1   :  { %v4_v0 = vld [vmem:[%s22_s0] ss:$0 sm:$0xff] }
   0x2   :  { %5 = vst [vmem:[%s23_s1] sm:$0xff] %v4_v0 }

// kernel: tile.49
= control target key start
LH: loop header
LB: loop body
LE: loop exit
PB: predicated region body
PF: predicated region fallthrough
CT: control target
= control target key end

     0   :  { %s69_s10 = smov 56   ;;  %s70_s11 = smov 40   ;;  %vm3_vm0 = vcmask 64512   ;;  %vm9_vm1 = vcmask 523712   ;;  %vm15_vm2 = vcmask 458112   ;;  %vm21_vm3 = vcmask 392512   ;;  %s113_s0 = inlined_call_operand.vmem [shape: f32[8,8], index: 0, kind: input, shape index: {}]   ;;  %s114_s1 = inlined_call_operand.vmem [shape: f32[1,64], index: 1, kind: output, shape index: {}]  }
   0x1   :  { %v55_v0 = vld [vmem:[%s113_s0 + $0x7] sm:$0x1]   ;;  %v57_v1 = vld [vmem:[%s113_s0 + $0x5] sm:$0x1]   ;;  %v56_v2 = vld [vmem:[%s113_s0 + $0x6] sm:$0x1]  }
   0x2   :  { %7 = vrot.lane.b32.xlu0 %v55_v0, %s69_s10  ;;  %19 = vrot.lane.b32.xlu1 %v57_v1, %s70_s11  ;;  %v58_v3 = vld [vmem:[%s113_s0 + $0x4] sm:$0x1]   ;;  %v2_v4 = vld [vmem:[%s113_s0] sm:$0x1]   ;;  %s71_s18 = smov 48   ;;  %s72_s19 = smov 32  }
   0x3   :  { %4 = vst.msk [vmem:[#allocation0] sm:$0x1] %vm3_vm0, %v2_v4   ;;  %v59_v5 = vld [vmem:[%s113_s0 + $0x3] sm:$0x1]   ;;  %v60_v6 = vld [vmem:[%s113_s0 + $0x2] sm:$0x1]  }
   0x4   :  { %s73_s24 = smov 24   ;;  %s74_s25 = smov 16   ;;  %v61_v7 = vld [vmem:[%s113_s0 + $0x1] sm:$0x1]   ;;  %vm27_vm4 = vcmask 326912   ;;  %vm33_vm5 = vcmask 261312  }
   0x5   :  { %s75_s0 = smov 8   ;;  %vm39_vm6 = vcmask 195712   ;;  %vm45_vm7 = vcmask 130112  }
   0x6   :  { %13 = vrot.lane.b32.xlu0 %v56_v2, %s71_s18  ;;  %25 = vrot.lane.b32.xlu1 %v58_v3, %s72_s19 }
   0xa   :  { %31 = vrot.lane.b32.xlu0 %v59_v5, %s73_s24  ;;  %37 = vrot.lane.b32.xlu1 %v60_v6, %s74_s25 }
   0xe   :  { %43 = vrot.lane.b32.xlu0 %v61_v7, %s75_s0 }
  0x74   :  { %v8_v8 = vpop.permute.xlu0 %7   ;;  %v20_v9 = vpop.permute.xlu1 %19  }
  0x75   :  { %10 = vst.msk [vmem:[#allocation0] sm:$0x1] %vm9_vm1, %v8_v8  }
  0x78   :  { %v14_v10 = vpop.permute.xlu0 %13   ;;  %v26_v11 = vpop.permute.xlu1 %25  }
  0x79   :  { %16 = vst.msk [vmem:[#allocation0] sm:$0x1] %vm15_vm2, %v14_v10  }
  0x7a   :  { %22 = vst.msk [vmem:[#allocation0] sm:$0x1] %vm21_vm3, %v20_v9  }
  0x7b   :  { %28 = vst.msk [vmem:[#allocation0] sm:$0x1] %vm27_vm4, %v26_v11  }
  0x7c   :  { %v32_v12 = vpop.permute.xlu0 %31   ;;  %v38_v13 = vpop.permute.xlu1 %37  }
  0x7d   :  { %34 = vst.msk [vmem:[#allocation0] sm:$0x1] %vm33_vm5, %v32_v12  }
  0x7e   :  { %40 = vst.msk [vmem:[#allocation0] sm:$0x1] %vm39_vm6, %v38_v13  }
  0x80   :  { %v44_v14 = vpop.permute.xlu0 %43  }
  0x81   :  { %46 = vst.msk [vmem:[#allocation0] sm:$0x1] %vm45_vm7, %v44_v14  }
  0x88   :  { %v51_v15 = vld [vmem:[#allocation0] sm:$0x1] }
  0x89   :  { %54 = vst [vmem:[%s114_s1] sm:$0x1] %v51_v15 }

// kernel: wide_basic_forward.1
= control target key start
LH: loop header
LB: loop body
LE: loop exit
PB: predicated region body
PF: predicated region fallthrough
CT: control target
= control target key end

     0   :  { %vm62_vm0 = vcmask 516096   ;;  %v1311_v0 = vmov 0.0   ;;  %vm64_vm1 = vcmask 523264   ;;  %vm1312_vm2 = vmmov 0   ;;  %s1803_s3 = inlined_call_operand.vmem [shape: f32[3,64,128], index: 3, kind: input, shape index: {}]   ;;  %s1804_s0 = inlined_call_operand.vmem [shape: f32[32,64], index: 0, kind: input, shape index: {}]   ;;  %s1805_s1 = inlined_call_operand.vmem [shape: f32[1,64], index: 1, kind: input, shape index: {}]   ;;  %s1806_s2 = inlined_call_operand.vmem [shape: f32[1,64], index: 2, kind: input, shape index: {}]   ;;  %s1807_s6 = inlined_call_operand.vmem [shape: f32[3,128,64], index: 6, kind: input, shape index: {}]   ;;  %s1808_s7 = inlined_call_operand.vmem [shape: f32[64,64], index: 7, kind: input, shape index: {}]   ;;  %s1809_s4 = inlined_call_operand.vmem [shape: f32[1,128], index: 4, kind: input, shape index: {}]   ;;  %s1810_s5 = inlined_call_operand.vmem [shape: f32[1,128], index: 5, kind: input, shape index: {}]   ;;  %s1811_s8 = inlined_call_operand.vmem [shape: f32[1,64], index: 8, kind: input, shape index: {}]   ;;  %s1812_s9 = inlined_call_operand.vmem [shape: f32[16,64], index: 9, kind: output, shape index: {}]  }
   0x1   :  { %1074 = vmatprep.subr.mxu0 %v1311_v0  ;;  %462 = vst [vmem:[#allocation3] sm:$0x1] %v1311_v0  ;;  %465 = vst [vmem:[#allocation3 + $0x11] sm:$0x1] %v1311_v0  ;;  %v906_v1 = vld [vmem:[%s1803_s3 + $0x78] sm:$0xff]  ;;  %1105 = vmatprep.subr.mxu1 %v1311_v0  ;;  %v905_v3 = vld [vmem:[%s1803_s3 + $0x70] sm:$0xff] }
   0x2   :  { %466 = vst [vmem:[#allocation3 + $0x12] sm:$0x1] %v1311_v0  ;;  %v84_v2 = vld [vmem:[%s1803_s3 + $0x38] sm:$0xff]  ;;  %63 = vst.msk [vmem:[#allocation2] sm:$0x1] %vm62_vm0, %v1311_v0  ;;  %1075 = vmatpush3.msra.mxu0 %v906_v1  ;;  %v83_v4 = vld [vmem:[%s1803_s3 + $0x30] sm:$0xff]  ;;  %1090 = vmatprep.mubr.msk.f32.mxu0 %vm1312_vm2, %v1311_v0 }
   0x3   :  { %67 = vst.msk [vmem:[#allocation2 + $0x11] sm:$0x1] %vm62_vm0, %v1311_v0  ;;  %68 = vst.msk [vmem:[#allocation2 + $0x12] sm:$0x1] %vm62_vm0, %v1311_v0  ;;  %1106 = vmatpush3.msra.mxu1 %v84_v2  ;;  %1076 = vmatprep.subr.mxu0 %v1311_v0  ;;  %v904_v5 = vld [vmem:[%s1803_s3 + $0x68] sm:$0xff]  ;;  %v903_v7 = vld [vmem:[%s1803_s3 + $0x60] sm:$0xff] }
   0x4   :  { %71 = vst.msk [vmem:[#allocation2 + $0x23] sm:$0x1] %vm62_vm0, %v1311_v0  ;;  %1107 = vmatprep.subr.mxu1 %v1311_v0  ;;  %v82_v6 = vld [vmem:[%s1803_s3 + $0x28] sm:$0xff]  ;;  %1077 = vmatpush3.msra.mxu0 %v905_v3  ;;  %v81_v8 = vld [vmem:[%s1803_s3 + $0x20] sm:$0xff]  ;;  %v902_v12 = vld [vmem:[%s1803_s3 + $0x58] sm:$0xff]  ;;  %vm890_vm3 = vcmask 523265  }
   0x5   :  { %1108 = vmatpush3.msra.mxu1 %v83_v4  ;;  %1078 = vmatprep.subr.mxu0 %v1311_v0  ;;  %v32_v9 = vld [vmem:[%s1804_s0] sm:$0xff]  ;;  %v80_v13 = vld [vmem:[%s1803_s3 + $0x18] sm:$0xff]  ;;  %v33_v15 = vld [vmem:[%s1804_s0 + $0x8] sm:$0xff] }
   0x6   :  { %1109 = vmatprep.subr.mxu1 %v1311_v0  ;;  %1079 = vmatpush3.msra.mxu0 %v904_v5  ;;  %v897_v10 = vld [vmem:[%s1805_s1] ss:$0 sm:$0xff]  ;;  %v34_v17 = vld [vmem:[%s1804_s0 + $0x10] sm:$0xff]  ;;  %v35_v22 = vld [vmem:[%s1804_s0 + $0x18] sm:$0xff] }
   0x7   :  { %1110 = vmatpush3.msra.mxu1 %v82_v6  ;;  %v898_v11 = vld [vmem:[%s1806_s2] ss:$0 sm:$0xff]  ;;  %1080 = vmatprep.subr.mxu0 %v1311_v0  ;;  %v43_v14 = vmul.f32 %v897_v10, %v32_v9  ;;  %v44_v16 = vmul.f32 %v897_v10, %v33_v15  ;;  %v901_v18 = vld [vmem:[%s1803_s3 + $0x50] sm:$0xff]  ;;  %v45_v21 = vmul.f32 %v897_v10, %v34_v17  ;;  %v900_v25 = vld [vmem:[%s1803_s3 + $0x48] sm:$0xff] }
   0x8   :  { %1111 = vmatprep.subr.mxu1 %v1311_v0  ;;  %1081 = vmatpush3.msra.mxu0 %v903_v7  ;;  %v79_v19 = vld [vmem:[%s1803_s3 + $0x10] sm:$0xff]  ;;  %v46_v24 = vmul.f32 %v897_v10, %v35_v22  ;;  %v78_v26 = vld [vmem:[%s1803_s3 + $0x8] sm:$0xff]  ;;  %v899_v31 = vld [vmem:[%s1803_s3 + $0x40] sm:$0xff] }
   0x9   :  { %1112 = vmatpush3.msra.mxu1 %v81_v8  ;;  %1082 = vmatprep.subr.mxu0 %v1311_v0  ;;  %v54_v20 = vadd.f32 %v898_v11, %v43_v14  ;;  %v55_v23 = vadd.f32 %v898_v11, %v44_v16  ;;  %v56_v28 = vadd.f32 %v898_v11, %v45_v21  ;;  %v77_v33 = vld [vmem:[%s1803_s3] sm:$0xff]  ;;  %v924_v35 = vld [vmem:[%s1803_s3 + $0xb8] sm:$0xff]  ;;  %v923_v38 = vld [vmem:[%s1803_s3 + $0xb0] sm:$0xff] }
   0xa   :  { %1113 = vmatprep.subr.mxu1 %v1311_v0  ;;  %1083 = vmatpush3.msra.mxu0 %v902_v12  ;;  %v57_v30 = vadd.f32 %v898_v11, %v46_v24  ;;  %v922_v41 = vld [vmem:[%s1803_s3 + $0xa8] sm:$0xff]  ;;  %v921_v44 = vld [vmem:[%s1803_s3 + $0xa0] sm:$0xff]  ;;  %v920_v45 = vld [vmem:[%s1803_s3 + $0x98] sm:$0xff] }
   0xb   :  { %1114 = vmatpush3.msra.mxu1 %v80_v13  ;;  %1084 = vmatprep.subr.mxu0 %v1311_v0  ;;  %v58_v27 = vmax.f32 %v54_v20, 0.0  ;;  %v59_v29 = vmax.f32 %v55_v23, 0.0  ;;  %v60_v32 = vmax.f32 %v56_v28, 0.0  ;;  %v919_v48 = vld [vmem:[%s1803_s3 + $0x90] sm:$0xff]  ;;  %v918_v51 = vld [vmem:[%s1803_s3 + $0x88] sm:$0xff]  ;;  %v917_v52 = vld [vmem:[%s1803_s3 + $0x80] sm:$0xff] }
   0xc   :  { %1115 = vmatprep.subr.mxu1 %v1311_v0  ;;  %1085 = vmatpush3.msra.mxu0 %v901_v18  ;;  %v61_v34 = vmax.f32 %v57_v30, 0.0  ;;  %v947_v58 = vld [vmem:[%s1807_s6 + $0xf8] sm:$0xff]  ;;  %v946_v60 = vld [vmem:[%s1807_s6 + $0xf0] sm:$0xff]  ;;  %v945_v62 = vld [vmem:[%s1807_s6 + $0xe8] sm:$0xff] }
   0xd   :  { %1116 = vmatpush3.msra.mxu1 %v79_v19  ;;  %1086 = vmatprep.subr.mxu0 %v1311_v0  ;;  %65 = vst.msk [vmem:[#allocation2 + $0x1] sm:$0xff] %vm64_vm1, %v58_v27  ;;  %66 = vst.msk [vmem:[#allocation2 + $0x9] sm:$0xff] %vm64_vm1, %v59_v29  ;;  %v491_v59 = vld [vmem:[%s1807_s6 + $0x78] sm:$0xff]  ;;  %v490_v61 = vld [vmem:[%s1807_s6 + $0x70] sm:$0xff] }
   0xe   :  { %1117 = vmatprep.subr.mxu1 %v1311_v0  ;;  %1087 = vmatpush3.msra.mxu0 %v900_v25  ;;  %69 = vst.msk [vmem:[#allocation2 + $0x13] sm:$0xff] %vm64_vm1, %v60_v32  ;;  %70 = vst.msk [vmem:[#allocation2 + $0x1b] sm:$0xff] %vm64_vm1, %v61_v34  ;;  %v489_v63 = vld [vmem:[%s1807_s6 + $0x68] sm:$0xff]  ;;  %v944_v1 = vld [vmem:[%s1807_s6 + $0xe0] sm:$0xff] }
   0xf   :  { %1118 = vmatpush3.msra.mxu1 %v78_v26  ;;  %1088 = vmatprep.subr.mxu0 %v1311_v0  ;;  %v488_v2 = vld [vmem:[%s1807_s6 + $0x60] sm:$0xff]  ;;  %v943_v3 = vld [vmem:[%s1807_s6 + $0xd8] sm:$0xff]  ;;  %v942_v5 = vld [vmem:[%s1807_s6 + $0xd0] sm:$0xff] }
  0x10   :  { %1089 = vmatpush3.msra.mxu0 %v899_v31  ;;  %1119 = vmatprep.subr.mxu1 %v1311_v0  ;;  %v487_v4 = vld [vmem:[%s1807_s6 + $0x58] sm:$0xff]  ;;  %v486_v6 = vld [vmem:[%s1807_s6 + $0x50] sm:$0xff]  ;;  %v941_v7 = vld [vmem:[%s1807_s6 + $0xc8] sm:$0xff] }
  0x11   :  { %1120 = vmatpush3.msra.mxu1 %v77_v33  ;;  %1121 = vmatprep.mubr.msk.f32.mxu1 %vm1312_vm2, %v1311_v0  ;;  %v485_v8 = vld [vmem:[%s1807_s6 + $0x48] sm:$0xff]  ;;  %v940_v9 = vld [vmem:[%s1807_s6 + $0xc0] sm:$0xff]  ;;  %v939_v11 = vld [vmem:[%s1807_s6 + $0xb8] sm:$0xff] }
  0x12   :  { %1136 = vmatprep.subr.mxu0 %v1311_v0  ;;  %1167 = vmatprep.subr.mxu1 %v1311_v0  ;;  %v484_v10 = vld [vmem:[%s1807_s6 + $0x40] sm:$0xff]  ;;  %v483_v12 = vld [vmem:[%s1807_s6 + $0x38] sm:$0xff]  ;;  %v938_v13 = vld [vmem:[%s1807_s6 + $0xb0] sm:$0xff] }
  0x13   :  { %v482_v14 = vld [vmem:[%s1807_s6 + $0x30] sm:$0xff]  ;;  %v937_v15 = vld [vmem:[%s1807_s6 + $0xa8] sm:$0xff]  ;;  %v936_v17 = vld [vmem:[%s1807_s6 + $0xa0] sm:$0xff] }
  0x14   :  { %v85_v36 = vld [vmem:[#allocation2 + $0x1] sm:$0xff]  ;;  %v86_v39 = vld [vmem:[#allocation2 + $0x9] sm:$0xff]  ;;  %v935_v19 = vld [vmem:[%s1807_s6 + $0x98] sm:$0xff] }
  0x15   :  { %v72_v37 = vld [vmem:[#allocation2] sm:$0xff]  ;;  %1091 = vmatmul.mubr.msk.f32.vlgmr.msra.gmra.mxu0 %vm64_vm1, %v85_v36  ;;  %v73_v40 = vld [vmem:[#allocation2 + $0x8] sm:$0xff]  ;;  %v87_v42 = vld [vmem:[#allocation2 + $0x11] sm:$0xff] }
  0x16   :  { %1122 = vmatmul.mubr.msk.f32.vlgmr.msra.gmra.mxu1 %vm64_vm1, %v72_v37  ;;  %1137 = vmatpush3.msra.mxu0 %v924_v35  ;;  %v74_v43 = vld [vmem:[#allocation2 + $0x10] sm:$0xff]  ;;  %v88_v46 = vld [vmem:[#allocation2 + $0x19] sm:$0xff]  ;;  %v89_v49 = vld [vmem:[#allocation2 + $0x21] sm:$0x3] }
  0x17   :  { %1093 = vmatprep.mubr.msk.f32.mxu0 %vm1312_vm2, %v1311_v0  ;;  %1138 = vmatprep.subr.mxu0 %v1311_v0  ;;  %v75_v47 = vld [vmem:[#allocation2 + $0x18] sm:$0xff]  ;;  %v76_v50 = vld [vmem:[#allocation2 + $0x20] sm:$0x3]  ;;  %v309_v53 = vld [vmem:[#allocation2 + $0x2] sm:$0xff] }
  0x18   :  { %1124 = vmatprep.mubr.msk.f32.mxu1 %vm1312_vm2, %v1311_v0  ;;  %1139 = vmatpush3.msra.mxu0 %v923_v38  ;;  %v310_v54 = vld [vmem:[#allocation2 + $0xa] sm:$0xff]  ;;  %v311_v55 = vld [vmem:[#allocation2 + $0x12] sm:$0xff]  ;;  %v312_v56 = vld [vmem:[#allocation2 + $0x1a] sm:$0xff] }
  0x19   :  { %1094 = vmatmul.mubr.msk.f32.gmra.mxu0 %vm64_vm1, %v86_v39  ;;  %1140 = vmatprep.subr.mxu0 %v1311_v0  ;;  %v313_v57 = vld [vmem:[#allocation2 + $0x22] sm:$0x3]  ;;  %v481_v16 = vld [vmem:[%s1807_s6 + $0x28] sm:$0xff]  ;;  %v479_v20 = vld [vmem:[%s1807_s6 + $0x18] sm:$0xff] }
  0x1a   :  { %1125 = vmatmul.mubr.msk.f32.gmra.mxu1 %vm64_vm1, %v73_v40  ;;  %1096 = vmatprep.mubr.msk.f32.mxu0 %vm1312_vm2, %v1311_v0  ;;  %v480_v18 = vld [vmem:[%s1807_s6 + $0x20] sm:$0xff]  ;;  %v934_v21 = vld [vmem:[%s1807_s6 + $0x90] sm:$0xff]  ;;  %v933_v23 = vld [vmem:[%s1807_s6 + $0x88] sm:$0xff] }
  0x1b   :  { %1141 = vmatpush3.msra.mxu0 %v922_v41  ;;  %1127 = vmatprep.mubr.msk.f32.mxu1 %vm1312_vm2, %v1311_v0  ;;  %v478_v22 = vld [vmem:[%s1807_s6 + $0x10] sm:$0xff]  ;;  %v477_v24 = vld [vmem:[%s1807_s6 + $0x8] sm:$0xff]  ;;  %v932_v25 = vld [vmem:[%s1807_s6 + $0x80] sm:$0xff] }
  0x1c   :  { %1142 = vmatprep.subr.mxu0 %v1311_v0  ;;  %1168 = vmatpush3.msra.mxu1 %v947_v58  ;;  %v476_v26 = vld [vmem:[%s1807_s6] sm:$0xff]  ;;  %v1673_v27 = vld [vmem:[%s1808_s7 + $0x38] sm:$0xff] }
  0x1d   :  { %1097 = vmatmul.mubr.msk.f32.gmra.mxu0 %vm64_vm1, %v87_v42  ;;  %1169 = vmatprep.subr.mxu1 %v1311_v0 }
  0x1e   :  { %1128 = vmatmul.mubr.msk.f32.gmra.mxu1 %vm64_vm1, %v74_v43  ;;  %1143 = vmatpush3.msra.mxu0 %v921_v44 }
  0x1f   :  { %1099 = vmatprep.mubr.msk.f32.mxu0 %vm1312_vm2, %v1311_v0  ;;  %1144 = vmatprep.subr.mxu0 %v1311_v0 }
  0x20   :  { %1130 = vmatprep.mubr.msk.f32.mxu1 %vm1312_vm2, %v1311_v0  ;;  %1145 = vmatpush3.msra.mxu0 %v920_v45 }
  0x21   :  { %1100 = vmatmul.mubr.msk.f32.gmra.mxu0 %vm64_vm1, %v88_v46  ;;  %1146 = vmatprep.subr.mxu0 %v1311_v0 }
  0x22   :  { %1131 = vmatmul.mubr.msk.f32.gmra.mxu1 %vm64_vm1, %v75_v47  ;;  %1102 = vmatprep.mubr.msk.f32.mxu0 %vm1312_vm2, %v1311_v0 }
  0x23   :  { %1147 = vmatpush3.msra.mxu0 %v919_v48  ;;  %1133 = vmatprep.mubr.msk.f32.mxu1 %vm1312_vm2, %v1311_v0 }
  0x24   :  { %1148 = vmatprep.subr.mxu0 %v1311_v0  ;;  %1170 = vmatpush3.msra.mxu1 %v946_v60 }
  0x25   :  { %1103 = vmatmul.mubr.msk.f32.gmra.mxu0 %vm64_vm1, %v89_v49  ;;  %1171 = vmatprep.subr.mxu1 %v1311_v0 }
  0x26   :  { %1134 = vmatmul.mubr.msk.f32.gmra.mxu1 %vm64_vm1, %v76_v50  ;;  %1149 = vmatpush3.msra.mxu0 %v918_v51  ;;  %v930_v50 = vld [vmem:[%s1809_s4] ss:$0 sm:$0xff] }
  0x27   :  { %1152 = vmatprep.mubr.msk.f32.mxu0 %vm1312_vm2, %v1311_v0  ;;  %1150 = vmatprep.subr.mxu0 %v1311_v0 }
  0x28   :  { %1199 = vmatprep.mubr.msk.f32.mxu1 %vm1312_vm2, %v1311_v0  ;;  %1151 = vmatpush3.msra.mxu0 %v917_v52  ;;  %v931_v52 = vld [vmem:[%s1810_s5] ss:$0 sm:$0xff] }
  0x29   :  { %1153 = vmatmul.mubr.msk.f32.vlgmr.msra.gmra.mxu0 %vm64_vm1, %v309_v53  ;;  %1208 = vmatprep.subr.mxu0 %v1311_v0 }
  0x2a   :  { %1155 = vmatprep.mubr.msk.f32.mxu0 %vm1312_vm2, %v1311_v0  ;;  %1209 = vmatpush3.msra.mxu0 %v491_v59 }
  0x2b   :  { %1210 = vmatprep.subr.mxu0 %v1311_v0  ;;  %1172 = vmatpush3.msra.mxu1 %v945_v62 }
  0x2c   :  { %1211 = vmatpush3.msra.mxu0 %v490_v61  ;;  %1173 = vmatprep.subr.mxu1 %v1311_v0 }
  0x2d   :  { %1156 = vmatmul.mubr.msk.f32.gmra.mxu0 %vm64_vm1, %v310_v54  ;;  %1212 = vmatprep.subr.mxu0 %v1311_v0 }
  0x2e   :  { %1158 = vmatprep.mubr.msk.f32.mxu0 %vm1312_vm2, %v1311_v0  ;;  %1213 = vmatpush3.msra.mxu0 %v489_v63 }
  0x2f   :  { %1174 = vmatpush3.msra.mxu1 %v944_v1  ;;  %1214 = vmatprep.subr.mxu0 %v1311_v0 }
  0x30   :  { %1175 = vmatprep.subr.mxu1 %v1311_v0  ;;  %1215 = vmatpush3.msra.mxu0 %v488_v2 }
  0x31   :  { %1159 = vmatmul.mubr.msk.f32.gmra.mxu0 %vm64_vm1, %v311_v55  ;;  %1176 = vmatpush3.msra.mxu1 %v943_v3 }
  0x32   :  { %1161 = vmatprep.mubr.msk.f32.mxu0 %vm1312_vm2, %v1311_v0  ;;  %1216 = vmatprep.subr.mxu0 %v1311_v0 }
  0x33   :  { %1177 = vmatprep.subr.mxu1 %v1311_v0  ;;  %1217 = vmatpush3.msra.mxu0 %v487_v4 }
  0x34   :  { %1178 = vmatpush3.msra.mxu1 %v942_v5  ;;  %1218 = vmatprep.subr.mxu0 %v1311_v0 }
  0x35   :  { %1162 = vmatmul.mubr.msk.f32.gmra.mxu0 %vm64_vm1, %v312_v56  ;;  %1179 = vmatprep.subr.mxu1 %v1311_v0 }
  0x36   :  { %1164 = vmatprep.mubr.msk.f32.mxu0 %vm1312_vm2, %v1311_v0  ;;  %1219 = vmatpush3.msra.mxu0 %v486_v6 }
  0x37   :  { %1180 = vmatpush3.msra.mxu1 %v941_v7  ;;  %1220 = vmatprep.subr.mxu0 %v1311_v0 }
  0x38   :  { %1181 = vmatprep.subr.mxu1 %v1311_v0  ;;  %1221 = vmatpush3.msra.mxu0 %v485_v8 }
  0x39   :  { %1165 = vmatmul.mubr.msk.f32.gmra.mxu0 %vm64_vm1, %v313_v57  ;;  %1182 = vmatpush3.msra.mxu1 %v940_v9 }
  0x3a   :  { %1240 = vmatprep.mubr.msk.f32.mxu0 %vm1312_vm2, %v1311_v0  ;;  %1222 = vmatprep.subr.mxu0 %v1311_v0 }
  0x3b   :  { %1183 = vmatprep.subr.mxu1 %v1311_v0  ;;  %1223 = vmatpush3.msra.mxu0 %v484_v10 }
  0x3c   :  { %1184 = vmatpush3.msra.mxu1 %v939_v11  ;;  %1224 = vmatprep.subr.mxu0 %v1311_v0 }
  0x3d   :  { %1185 = vmatprep.subr.mxu1 %v1311_v0  ;;  %1225 = vmatpush3.msra.mxu0 %v483_v12 }
  0x3e   :  { %1186 = vmatpush3.msra.mxu1 %v938_v13  ;;  %1226 = vmatprep.subr.mxu0 %v1311_v0 }
  0x3f   :  { %1187 = vmatprep.subr.mxu1 %v1311_v0  ;;  %1227 = vmatpush3.msra.mxu0 %v482_v14 }
  0x40   :  { %1188 = vmatpush3.msra.mxu1 %v937_v15  ;;  %1228 = vmatprep.subr.mxu0 %v1311_v0 }
  0x41   :  { %1189 = vmatprep.subr.mxu1 %v1311_v0  ;;  %1229 = vmatpush3.msra.mxu0 %v481_v16 }
  0x42   :  { %1190 = vmatpush3.msra.mxu1 %v936_v17  ;;  %1230 = vmatprep.subr.mxu0 %v1311_v0 }
  0x43   :  { %1191 = vmatprep.subr.mxu1 %v1311_v0  ;;  %1231 = vmatpush3.msra.mxu0 %v480_v18 }
  0x44   :  { %1192 = vmatpush3.msra.mxu1 %v935_v19  ;;  %1232 = vmatprep.subr.mxu0 %v1311_v0 }
  0x45   :  { %1193 = vmatprep.subr.mxu1 %v1311_v0  ;;  %1233 = vmatpush3.msra.mxu0 %v479_v20  ;;  %v963_v20 = vld [vmem:[%s1807_s6 + $0x178] sm:$0xff] }
  0x46   :  { %1194 = vmatpush3.msra.mxu1 %v934_v21  ;;  %1234 = vmatprep.subr.mxu0 %v1311_v0 }
  0x47   :  { %1195 = vmatprep.subr.mxu1 %v1311_v0  ;;  %1235 = vmatpush3.msra.mxu0 %v478_v22 }
  0x48   :  { %1196 = vmatpush3.msra.mxu1 %v933_v23  ;;  %1236 = vmatprep.subr.mxu0 %v1311_v0 }
  0x49   :  { %1197 = vmatprep.subr.mxu1 %v1311_v0  ;;  %1237 = vmatpush3.msra.mxu0 %v477_v24  ;;  %v962_v24 = vld [vmem:[%s1807_s6 + $0x170] sm:$0xff] }
  0x4a   :  { %1198 = vmatpush3.msra.mxu1 %v932_v25  ;;  %1238 = vmatprep.subr.mxu0 %v1311_v0  ;;  %v790_v25 = vld [vmem:[%s1808_s7 + $0x30] sm:$0xff] }
  0x4b   :  { %1239 = vmatpush3.msra.mxu0 %v476_v26  ;;  %1249 = vmatprep.subr.mxu1 %v1311_v0 }
  0x4c   :  { %1290 = vmatprep.subr.mxu0 %v1673_v27 }
  0xd5   :  { %v180_v28 = vpop.f32.mrf.mxu0 }
  0xd6   :  { %v285_v29 = vpop.f32.mrf.mxu1 }
  0xd7   :  { %v1092_v30 = vpop.f32.mrf.mxu0  ;;  %v286_v48 = vadd.f32 %v285_v29, %v180_v28  ;;  %v961_v28 = vld [vmem:[%s1807_s6 + $0x168] sm:$0xff] }
  0xd8   :  { %v1123_v31 = vpop.f32.mrf.mxu1  ;;  %v789_v29 = vld [vmem:[%s1808_s7 + $0x28] sm:$0xff]  ;;  %v960_v30 = vld [vmem:[%s1807_s6 + $0x160] sm:$0xff] }
  0xd9   :  { %v185_v32 = vpop.f32.mrf.mxu0 }
  0xda   :  { %v290_v33 = vpop.f32.mrf.mxu1 }
  0xdb   :  { %v1095_v34 = vpop.f32.mrf.mxu0  ;;  %v291_v54 = vadd.f32 %v290_v33, %v185_v32  ;;  %v958_v33 = vld [vmem:[%s1807_s6 + $0x150] sm:$0xff] }
  0xdc   :  { %v1126_v35 = vpop.f32.mrf.mxu1  ;;  %v957_v34 = vld [vmem:[%s1807_s6 + $0x148] sm:$0xff] }
  0xdd   :  { %v190_v36 = vpop.f32.mrf.mxu0 }
  0xde   :  { %v295_v37 = vpop.f32.mrf.mxu1 }
  0xdf   :  { %v1098_v38 = vpop.f32.mrf.mxu0  ;;  %v296_v60 = vadd.f32 %v295_v37, %v190_v36  ;;  %v788_v36 = vld [vmem:[%s1808_s7 + $0x20] sm:$0xff] }
  0xe0   :  { %v1129_v39 = vpop.f32.mrf.mxu1  ;;  %v956_v38 = vld [vmem:[%s1807_s6 + $0x140] sm:$0xff] }
  0xe1   :  { %v195_v40 = vpop.f32.mrf.mxu0  ;;  %v787_v39 = vld [vmem:[%s1808_s7 + $0x18] sm:$0xff] }
  0xe2   :  { %v300_v41 = vpop.f32.mrf.mxu1 }
  0xe3   :  { %v1101_v42 = vpop.f32.mrf.mxu0  ;;  %v301_v4 = vadd.f32 %v300_v41, %v195_v40  ;;  %v955_v40 = vld [vmem:[%s1807_s6 + $0x138] sm:$0xff]  ;;  %v786_v41 = vld [vmem:[%s1808_s7 + $0x10] sm:$0xff] }
  0xe4   :  { %v1132_v43 = vpop.f32.mrf.mxu1  ;;  %v954_v42 = vld [vmem:[%s1807_s6 + $0x130] sm:$0xff] }
  0xe5   :  { %v200_v44 = vpop.f32.mrf.mxu0  ;;  %v785_v43 = vld [vmem:[%s1808_s7 + $0x8] sm:$0xff] }
  0xe6   :  { %v305_v45 = vpop.f32.mrf.mxu1 }
  0xe7   :  { %v1104_v46 = vpop.f32.mrf.mxu0  ;;  %v306_v11 = vadd.f32 %v305_v45, %v200_v44  ;;  %v953_v44 = vld [vmem:[%s1807_s6 + $0x128] sm:$0xff]  ;;  %v784_v45 = vld [vmem:[%s1808_s7] sm:$0xff] }
  0xe8   :  { %v1135_v47 = vpop.f32.mrf.mxu1  ;;  %v952_v46 = vld [vmem:[%s1807_s6 + $0x120] sm:$0xff] }
  0xe9   :  { %v404_v49 = vpop.f32.mrf.mxu0  ;;  %v951_v47 = vld [vmem:[%s1807_s6 + $0x118] sm:$0xff] }
  0xea   :  { %v428_v51 = vadd.f32 %v404_v49, %v286_v48  ;;  %v781_v48 = vld [vmem:[%s1804_s0] ss:$2 sm:$0xff]  ;;  %v964_v49 = vld [vmem:[%s1804_s0 + $0x10] ss:$2 sm:$0xff] }
  0xeb   :  { %v1154_v53 = vpop.f32.mrf.mxu0 }
  0xec   :  { %v440_v55 = vmul.f32 %v930_v50, %v428_v51  ;;  %v949_v51 = vld [vmem:[%s1807_s6 + $0x108] sm:$0xff] }
  0xed   :  { %v409_v56 = vpop.f32.mrf.mxu0 }
  0xee   :  { %v452_v57 = vadd.f32 %v931_v52, %v440_v55  ;;  %v429_v58 = vadd.f32 %v409_v56, %v291_v54 }
  0xef   :  { %v1157_v59 = vpop.f32.mrf.mxu0 }
  0xf0   :  { %v457_v61 = vmax.f32 %v452_v57, 0.0  ;;  %v441_v62 = vmul.f32 %v930_v50, %v429_v58 }
  0xf1   :  { %v414_v63 = vpop.f32.mrf.mxu0 }
  0xf2   :  { %463 = vst [vmem:[#allocation3 + $0x1] sm:$0xff] %v457_v61  ;;  %v453_v1 = vadd.f32 %v931_v52, %v441_v62  ;;  %v430_v2 = vadd.f32 %v414_v63, %v296_v60 }
  0xf3   :  { %v1160_v3 = vpop.f32.mrf.mxu0 }
  0xf4   :  { %v458_v5 = vmax.f32 %v453_v1, 0.0  ;;  %v442_v6 = vmul.f32 %v930_v50, %v430_v2 }
  0xf5   :  { %v419_v7 = vpop.f32.mrf.mxu0 }
  0xf6   :  { %464 = vst [vmem:[#allocation3 + $0x9] sm:$0xff] %v458_v5  ;;  %v454_v8 = vadd.f32 %v931_v52, %v442_v6  ;;  %v431_v9 = vadd.f32 %v419_v7, %v301_v4 }
  0xf7   :  { %v1163_v10 = vpop.f32.mrf.mxu0 }
  0xf8   :  { %v459_v12 = vmax.f32 %v454_v8, 0.0  ;;  %v443_v13 = vmul.f32 %v930_v50, %v431_v9  ;;  %v967_v10 = vld [vmem:[%s1811_s8] ss:$0 sm:$0xff] }
  0xf9   :  { %v424_v14 = vpop.f32.mrf.mxu0 }
  0xfa   :  { %467 = vst [vmem:[#allocation3 + $0x11] sm:$0xfc] %v459_v12  ;;  %v455_v15 = vadd.f32 %v931_v52, %v443_v13  ;;  %v432_v16 = vadd.f32 %v424_v14, %v306_v11 }
  0xfb   :  { %v1166_v17 = vpop.f32.mrf.mxu0 }
  0xfc   :  { %v460_v18 = vmax.f32 %v455_v15, 0.0  ;;  %v444_v19 = vmul.f32 %v930_v50, %v432_v16  ;;  %v950_v50 = vld [vmem:[%s1807_s6 + $0x110] sm:$0xff] }
  0xfd   :  { %v493_v21 = vld [vmem:[#allocation3 + $0x1] ss:$2 sm:$0xff]  ;;  %v471_v22 = vld [vmem:[#allocation3] ss:$2 sm:$0xff] }
  0xfe   :  { %468 = vst [vmem:[#allocation3 + $0x19] sm:$0xff] %v460_v18  ;;  %v456_v23 = vadd.f32 %v931_v52, %v444_v19  ;;  %1200 = vmatmul.mubr.f32.vlgmr.msra.gmra.mxu1 %v493_v21  ;;  %1241 = vmatmul.mubr.f32.vlgmr.msra.gmra.mxu0 %v471_v22  ;;  %v948_v52 = vld [vmem:[%s1807_s6 + $0x100] sm:$0xff]  ;;  %v676_v53 = vld [vmem:[#allocation3 + $0x2] ss:$2 sm:$0xff] }
  0xff   :  { %1250 = vmatpush3.msra.mxu1 %v963_v20  ;;  %1202 = vmatprep.mubr.msk.f32.mxu1 %vm1312_vm2, %v1311_v0 }
 0x100   :  { %v461_v26 = vmax.f32 %v456_v23, 0.0  ;;  %1251 = vmatprep.subr.mxu1 %v1311_v0  ;;  %1243 = vmatprep.mubr.msk.f32.mxu0 %vm1312_vm2, %v1311_v0 }
 0x101   :  { %1252 = vmatpush3.msra.mxu1 %v962_v24  ;;  %1291 = vmatpush3.msra.mxu0 %v1673_v27  ;;  %v959_v27 = vld [vmem:[%s1807_s6 + $0x158] sm:$0xff] }
 0x102   :  { %469 = vst [vmem:[#allocation3 + $0x21] sm:$0x3] %v461_v26  ;;  %1253 = vmatprep.subr.mxu1 %v1311_v0  ;;  %1292 = vmatprep.subr.mxu0 %v790_v25 }
 0x103   :  { %1254 = vmatpush3.msra.mxu1 %v961_v28  ;;  %1293 = vmatpush3.msra.mxu0 %v790_v25 }
 0x104   :  { %1255 = vmatprep.subr.mxu1 %v1311_v0  ;;  %1294 = vmatprep.subr.mxu0 %v789_v29 }
 0x105   :  { %1256 = vmatpush3.msra.mxu1 %v960_v30  ;;  %v495_v31 = vld [vmem:[#allocation3 + $0x11] ss:$2 sm:$0xff]  ;;  %v473_v32 = vld [vmem:[#allocation3 + $0x10] ss:$2 sm:$0xff]  ;;  %1295 = vmatpush3.msra.mxu0 %v789_v29 }
 0x106   :  { %1257 = vmatprep.subr.mxu1 %v1311_v0  ;;  %1203 = vmatmul.mubr.f32.gmra.mxu1 %v495_v31  ;;  %v475_v37 = vld [vmem:[#allocation3 + $0x20] ss:$2 sm:$0x1] }
 0x107   :  { %1244 = vmatmul.mubr.f32.gmra.mxu0 %v473_v32  ;;  %1258 = vmatpush3.msra.mxu1 %v959_v27  ;;  %v678_v54 = vld [vmem:[#allocation3 + $0x12] ss:$2 sm:$0xff] }
 0x108   :  { %1259 = vmatprep.subr.mxu1 %v1311_v0  ;;  %1205 = vmatprep.mubr.msk.f32.mxu1 %vm1312_vm2, %v1311_v0 }
 0x109   :  { %1260 = vmatpush3.msra.mxu1 %v958_v33  ;;  %1246 = vmatprep.mubr.msk.f32.mxu0 %vm1312_vm2, %v1311_v0  ;;  %v497_v35 = vld [vmem:[#allocation3 + $0x21] ss:$2 sm:$0x1]  ;;  %v680_v55 = vld [vmem:[#allocation3 + $0x22] ss:$2 sm:$0x1] }
 0x10a   :  { %1261 = vmatprep.subr.mxu1 %v1311_v0  ;;  %1206 = vmatmul.mubr.f32.gmra.mxu1 %v497_v35 }
 0x10b   :  { %1247 = vmatmul.mubr.f32.gmra.mxu0 %v475_v37  ;;  %1262 = vmatpush3.msra.mxu1 %v957_v34 }
 0x10c   :  { %1263 = vmatprep.subr.mxu1 %v1311_v0  ;;  %1296 = vmatprep.subr.mxu0 %v788_v36 }
 0x10d   :  { %1264 = vmatpush3.msra.mxu1 %v956_v38  ;;  %1297 = vmatpush3.msra.mxu0 %v788_v36 }
 0x10e   :  { %1265 = vmatprep.subr.mxu1 %v1311_v0  ;;  %1298 = vmatprep.subr.mxu0 %v787_v39 }
 0x10f   :  { %1266 = vmatpush3.msra.mxu1 %v955_v40  ;;  %1299 = vmatpush3.msra.mxu0 %v787_v39 }
 0x110   :  { %1267 = vmatprep.subr.mxu1 %v1311_v0  ;;  %1300 = vmatprep.subr.mxu0 %v786_v41 }
 0x111   :  { %1268 = vmatpush3.msra.mxu1 %v954_v42  ;;  %1301 = vmatpush3.msra.mxu0 %v786_v41 }
 0x112   :  { %1269 = vmatprep.subr.mxu1 %v1311_v0  ;;  %1302 = vmatprep.subr.mxu0 %v785_v43 }
 0x113   :  { %1270 = vmatpush3.msra.mxu1 %v953_v44  ;;  %1303 = vmatpush3.msra.mxu0 %v785_v43 }
 0x114   :  { %1271 = vmatprep.subr.mxu1 %v1311_v0  ;;  %1304 = vmatprep.subr.mxu0 %v784_v45 }
 0x115   :  { %1272 = vmatpush3.msra.mxu1 %v952_v46  ;;  %1281 = vmatprep.mubr.msk.f32.mxu1 %vm1312_vm2, %v1311_v0 }
 0x116   :  { %1273 = vmatprep.subr.mxu1 %v1311_v0  ;;  %1305 = vmatpush3.msra.mxu0 %v784_v45 }
 0x117   :  { %1274 = vmatpush3.msra.mxu1 %v951_v47  ;;  %1306 = vmatprep.mubr.msk.f32.mxu0 %vm64_vm1, %v781_v48 }
 0x118   :  { %1275 = vmatprep.subr.mxu1 %v1311_v0  ;;  %1307 = vmatmul.mubr.msk.f32.vlgmr.msra.gmra.mxu0 %vm64_vm1, %v964_v49 }
 0x119   :  { %1276 = vmatpush3.msra.mxu1 %v950_v50 }
 0x11a   :  { %1277 = vmatprep.subr.mxu1 %v1311_v0 }
 0x11b   :  { %1278 = vmatpush3.msra.mxu1 %v949_v51 }
 0x11c   :  { %1279 = vmatprep.subr.mxu1 %v1311_v0 }
 0x11d   :  { %1280 = vmatpush3.msra.mxu1 %v948_v52 }
 0x11e   :  { %1282 = vmatmul.mubr.f32.vlgmr.msra.gmra.mxu1 %v676_v53 }
 0x11f   :  { %1284 = vmatprep.mubr.msk.f32.mxu1 %vm1312_vm2, %v1311_v0 }
 0x122   :  { %1285 = vmatmul.mubr.f32.gmra.mxu1 %v678_v54 }
 0x123   :  { %1287 = vmatprep.mubr.msk.f32.mxu1 %vm1312_vm2, %v1311_v0 }
 0x126   :  { %1288 = vmatmul.mubr.f32.gmra.mxu1 %v680_v55 }
 0x1be   :  { %v581_v56 = vpop.f32.mrf.mxu1  ;;  %v661_v57 = vpop.f32.mrf.mxu0 }
 0x1bf   :  { %v662_v6 = vadd.f32 %v661_v57, %v581_v56 }
 0x1c0   :  { %v1201_v58 = vpop.f32.mrf.mxu1  ;;  %v1242_v59 = vpop.f32.mrf.mxu0 }
 0x1c6   :  { %v586_v60 = vpop.f32.mrf.mxu1 }
 0x1c7   :  { %v666_v61 = vpop.f32.mrf.mxu0 }
 0x1c8   :  { %v1204_v62 = vpop.f32.mrf.mxu1  ;;  %v667_v11 = vadd.f32 %v666_v61, %v586_v60 }
 0x1c9   :  { %v1245_v63 = vpop.f32.mrf.mxu0 }
 0x1ca   :  { %v591_v1 = vpop.f32.mrf.mxu1 }
 0x1cb   :  { %v671_v2 = vpop.f32.mrf.mxu0 }
 0x1cc   :  { %v1207_v3 = vpop.f32.mrf.mxu1  ;;  %v672_v18 = vadd.f32 %v671_v2, %v591_v1 }
 0x1cd   :  { %v1248_v4 = vpop.f32.mrf.mxu0 }
 0x1d8   :  { %v1308_v5 = vpop.f32.mrf.mxu0 }
 0x1d9   :  { %v884_v12 = vrot.slane %v1308_v5, 7 }
 0x1da   :  { %v864_v8 = vpop.f32.mrf.mxu0 }
 0x1de   :  { %v764_v7 = vpop.f32.mrf.mxu1 }
 0x1df   :  { %v778_v9 = vadd.f32 %v764_v7, %v662_v6 }
 0x1e0   :  { %v1283_v0 = vpop.f32.mrf.mxu1 }
 0x1e1   :  { %v874_v13 = vadd.f32 %v864_v8, %v778_v9 }
 0x1e2   :  { %v769_v14 = vpop.f32.mrf.mxu1 }
 0x1e3   :  { %v881_v15 = vadd.f32 %v967_v10, %v874_v13  ;;  %v779_v16 = vadd.f32 %v769_v14, %v667_v11 }
 0x1e4   :  { %v1286_v17 = vpop.f32.mrf.mxu1 }
 0x1e5   :  { %882 = vst.msk [vmem:[%s1812_s9] sm:$0xff] %vm64_vm1, %v881_v15  ;;  %v886_v19 = vadd.f32 %v884_v12, %v779_v16 }
 0x1e6   :  { %v774_v20 = vpop.f32.mrf.mxu1 }
 0x1e7   :  { %v888_v21 = vadd.f32 %v967_v10, %v886_v19  ;;  %v780_v22 = vadd.f32 %v774_v20, %v672_v18 }
 0x1e8   :  { %v1289_v23 = vpop.f32.mrf.mxu1 }
 0x1e9   :  { %891 = vst.msk [vmem:[%s1812_s9 + $0x7] sm:$0xfe] %vm890_vm3, %v888_v21  ;;  %v887_v24 = vadd.f32 %v884_v12, %v780_v22 }
 0x1eb   :  { %v889_v25 = vadd.f32 %v967_v10, %v887_v24 }
 0x1ed   :  { %892 = vst.msk [vmem:[%s1812_s9 + $0xf] sm:$0x1] %vm62_vm0, %v889_v25 }

</bundles_post_ra>
